<compile_context>
chip_gen: v6e
topology: v6e:2x2x1
jax: 0.10.0
libtpu: 0.0.40
codegen_flags: <defaults>
</compile_context>

<pallas_src>
import jax
import jax.numpy as jnp
from jax import lax
from jax.experimental import pallas as pl
from jax.experimental.pallas import tpu as pltpu


def _rup(v, m):
    return (v + m - 1) // m * m


def _num_parallel_blocks(N):
    """Batch blocks = one per TensorCore (2 on v7x, 1 on v5e/v6e)."""
    try:
        kind = jax.devices()[0].device_kind.lower()
    except Exception:
        kind = ""
    n_tc = 2 if "v7" in kind else 1
    nb = min(N, n_tc)
    while nb > 1 and N % nb:
        nb -= 1
    return max(nb, 1)


def _build_fused_conv_block(NB, L_blk, H, W, Cin_p, c1_p, c2_p, Ctot_p,
                            c1, c2, has_ds, sb_offsets, dtype):
    """One pallas_call computing the whole ConvBlock for B images per step."""
    K, P = 3, 1
    # Tap lane shifts, (kh, kw) major order -- must match weight flattening.
    tap_shifts = [(kh - P) * W + (kw - P) for kh in range(K) for kw in range(K)]
    o_s1, o_s2, o_s3, o_sd, sb_len = sb_offsets

    def kernel(x_ref, m_ref, sb_ref, w1_ref, w2_ref, w3_ref, *rest):
        if has_ds:
            wd_ref, out_ref = rest
        else:
            (out_ref,) = rest

        x = x_ref[...].astype(jnp.float32)          # (Cin_p, L)
        masks = m_ref[...]                          # (9, L) f32 {0,1}

        def bn_relu(t, off, c):
            # Per-channel affine (lane broadcast of a (c,1) column) + ReLU.
            s = sb_ref[off:off + c]
            b = sb_ref[off + c:off + 2 * c]
            return jnp.maximum(t * s + b, 0.0)

        def conv3x3(a, w_ref):
            # a: (Ci_p, L) f32; w_ref: (Co_p, 9*Ci_p) bf16, (kh,kw) major.
            L = a.shape[1]
            rows = []
            for k, s in enumerate(tap_shifts):
                if s == 0:
                    rows.append(a)                  # centre tap: always valid
                else:
                    # out[:, p] = a[:, p + s]; wrapped lanes are masked off.
                    r = pltpu.roll(a, shift=(-s) % L, axis=1)
                    rows.append(r * masks[k:k + 1, :])
            col = jnp.concatenate(rows, axis=0).astype(jnp.bfloat16)
            return jnp.dot(w_ref[...], col,
                           preferred_element_type=jnp.float32)

        o1 = conv3x3(bn_relu(x, o_s1, Cin_p), w1_ref)   # (c1_p, L)
        o2 = conv3x3(bn_relu(o1, o_s2, c1_p), w2_ref)   # (c2_p, L)
        o3 = conv3x3(bn_relu(o2, o_s3, c2_p), w3_ref)   # (c2_p, L)

        if has_ds:
            # 1x1 downsample; wd rows already laid out in padded output order.
            xd = bn_relu(x, o_sd, Cin_p).astype(jnp.bfloat16)
            res = jnp.dot(wd_ref[...], xd, preferred_element_type=jnp.float32)
            r1 = res[0:c1_p]
            r2 = res[c1_p:c1_p + c2_p]
            r3 = res[c1_p + c2_p:]
        else:
            # Identity residual: x channels split to match the concat layout.
            def padrows(a, rows):
                if a.shape[0] == rows:
                    return a
                z = jnp.zeros((rows - a.shape[0], a.shape[1]), a.dtype)
                return jnp.concatenate([a, z], axis=0)
            r1 = padrows(x[0:c1], c1_p)
            r2 = padrows(x[c1:c1 + c2], c2_p)
            r3 = padrows(x[c1 + c2:c1 + 2 * c2], c2_p)

        dt = out_ref.dtype
        out_ref[0:c1_p] = (o1 + r1).astype(dt)
        out_ref[c1_p:c1_p + c2_p] = (o2 + r2).astype(dt)
        out_ref[c1_p + c2_p:] = (o3 + r3).astype(dt)

    def const_spec(shape):
        return pl.BlockSpec(shape, lambda i: (0, 0))

    in_specs = [
        pl.BlockSpec((Cin_p, L_blk), lambda i: (0, i)),  # x (lane-blocked batch)
        const_spec((9, L_blk)),                          # tap validity masks
        const_spec((sb_len, 1)),                         # packed BN scale/bias
        const_spec((c1_p, 9 * Cin_p)),                   # w1 (bf16)
        const_spec((c2_p, 9 * c1_p)),                    # w2 (bf16)
        const_spec((c2_p, 9 * c2_p)),                    # w3 (bf16)
    ]
    if has_ds:
        in_specs.append(const_spec((Ctot_p, Cin_p)))     # wd (bf16, 1x1)

    return pl.pallas_call(
        kernel,
        out_shape=jax.ShapeDtypeStruct((Ctot_p, NB * L_blk), dtype),
        grid_spec=pltpu.PrefetchScalarGridSpec(
            num_scalar_prefetch=0,
            grid=(NB,),
            in_specs=in_specs,
            out_specs=pl.BlockSpec((Ctot_p, L_blk), lambda i: (0, i)),
        ),
        compiler_params=pltpu.CompilerParams(
            dimension_semantics=("parallel",)),
    )


def conv_block_forward(x_nchw, p):
    """ConvBlock forward (eval-mode BN). Input/output are NCHW."""
    N, Cin, H, W = x_nchw.shape
    HW = H * W
    c1 = p["w1"].shape[3]
    c2 = p["w2"].shape[3]
    has_ds = p["wd"] is not None
    Cout = p["wd"].shape[3] if has_ds else Cin

    Cin_p = _rup(Cin, 8)
    c1_p = _rup(c1, 8)
    c2_p = _rup(c2, 8)
    Ctot_p = c1_p + 2 * c2_p

    NB = _num_parallel_blocks(N)                 # grid blocks (<= #TensorCores)
    B = N // NB
    L_blk = B * HW                               # lanes per grid step

    # x: NCHW -> (Cin_p, N*HW); channels on sublanes, batch*spatial on lanes.
    xf = jnp.transpose(x_nchw.reshape(N, Cin, HW), (1, 0, 2)).reshape(Cin, N * HW)
    if Cin_p > Cin:
        xf = jnp.pad(xf, ((0, Cin_p - Cin), (0, 0)))

    # 9 tap validity masks for one batch block (identical for every block).
    pos = jnp.arange(L_blk, dtype=jnp.int32) % HW
    hh, ww = pos // W, pos % W
    mrows = []
    for kh in range(3):
        for kw in range(3):
            dh, dw = kh - 1, kw - 1
            mrows.append((hh + dh >= 0) & (hh + dh < H) &
                         (ww + dw >= 0) & (ww + dw < W))
    masks = jnp.stack(mrows).astype(jnp.float32)           # (9, L_blk)

    # Weights: HWIO -> zero-padded (Co_p, 9*Ci_p) bf16, (kh,kw) major / ci minor.
    def wflat(w_hwio, ci_p, co_p):
        Kh, Kw, I, O = w_hwio.shape
        wp = jnp.zeros((Kh, Kw, ci_p, co_p), jnp.float32)
        wp = wp.at[:, :, :I, :O].set(w_hwio)
        return wp.reshape(Kh * Kw * ci_p, co_p).T.astype(jnp.bfloat16)

    w1 = wflat(p["w1"], Cin_p, c1_p)
    w2 = wflat(p["w2"], c1_p, c2_p)
    w3 = wflat(p["w3"], c2_p, c2_p)

    # Packed BN scale/bias (zero padding keeps padded channels identically 0).
    def padvec(v, c_p):
        v = v.reshape(-1)
        return jnp.pad(v, (0, c_p - v.shape[0]))

    vecs = [padvec(p["s1"], Cin_p), padvec(p["b1"], Cin_p),
            padvec(p["s2"], c1_p), padvec(p["b2"], c1_p),
            padvec(p["s3"], c2_p), padvec(p["b3"], c2_p)]
    o_s1, o_s2 = 0, 2 * Cin_p
    o_s3 = o_s2 + 2 * c1_p
    o_sd = o_s3 + 2 * c2_p
    if has_ds:
        vecs += [padvec(p["sd"], Cin_p), padvec(p["bd"], Cin_p)]
    sb = jnp.concatenate(vecs).reshape(-1, 1).astype(jnp.float32)
    sb_len = sb.shape[0]

    args = [xf, masks, sb, w1, w2, w3]
    if has_ds:
        # 1x1 downsample weight rows pre-scattered into the PADDED output
        # channel layout so the kernel's residual add is slice-aligned.
        wm = p["wd"].reshape(Cin, Cout).T                   # (Cout, Cin)
        wd = jnp.zeros((Ctot_p, Cin_p), jnp.float32)
        wd = wd.at[0:c1, :Cin].set(wm[0:c1])
        wd = wd.at[c1_p:c1_p + c2, :Cin].set(wm[c1:c1 + c2])
        wd = wd.at[c1_p + c2_p:c1_p + c2_p + c2, :Cin].set(wm[c1 + c2:])
        args.append(wd.astype(jnp.bfloat16))

    fn = _build_fused_conv_block(NB, L_blk, H, W, Cin_p, c1_p, c2_p, Ctot_p,
                                 c1, c2, has_ds,
                                 (o_s1, o_s2, o_s3, o_sd, sb_len),
                                 x_nchw.dtype)
    out = fn(*args)                                         # (Ctot_p, N*HW)

    # Strip channel padding, back to NCHW.
    o = out.reshape(Ctot_p, N, HW)
    y = jnp.concatenate([o[0:c1], o[c1_p:c1_p + c2],
                         o[c1_p + c2_p:c1_p + c2_p + c2]], axis=0)
    return jnp.transpose(y, (1, 0, 2)).reshape(N, Cout, H, W)


# ----------------------- pure-JAX reference (for check) -----------------------

def _conv_ref(x_nhwc, w_hwio, padding):
    return lax.conv_general_dilated(
        x_nhwc, w_hwio, window_strides=(1, 1),
        padding=[(padding, padding), (padding, padding)],
        dimension_numbers=("NHWC", "HWIO", "NHWC"))


def _bn_relu_ref(x_nhwc, scale, bias):
    return jnp.maximum(x_nhwc * scale.reshape(1, 1, 1, -1)
                       + bias.reshape(1, 1, 1, -1), 0.0)


def conv_block_reference(x_nchw, p):
    x = jnp.transpose(x_nchw, (0, 2, 3, 1))
    o1 = _conv_ref(_bn_relu_ref(x, p["s1"], p["b1"]), p["w1"], 1)
    o2 = _conv_ref(_bn_relu_ref(o1, p["s2"], p["b2"]), p["w2"], 1)
    o3 = _conv_ref(_bn_relu_ref(o2, p["s3"], p["b3"]), p["w3"], 1)
    cat = jnp.concatenate([o1, o2, o3], axis=-1)
    res = _conv_ref(_bn_relu_ref(x, p["sd"], p["bd"]), p["wd"], 0) \
        if p["wd"] is not None else x
    return jnp.transpose(cat + res, (0, 3, 1, 2))


# ------------------------------ parameter init --------------------------------

def _bn_folded(key, c):
    k1, k2, k3, k4 = jax.random.split(key, 4)
    gamma = 1.0 + 0.1 * jax.random.normal(k1, (c,), jnp.float32)
    beta = 0.1 * jax.random.normal(k2, (c,), jnp.float32)
    mean = 0.1 * jax.random.normal(k3, (c,), jnp.float32)
    var = jax.random.uniform(k4, (c,), jnp.float32, minval=0.5, maxval=1.5)
    eps = 1e-5
    scale = gamma / jnp.sqrt(var + eps)
    bias = beta - mean * scale
    return scale.reshape(1, c), bias.reshape(1, c)


def _conv_w(key, k, cin, cout):
    # HWIO layout (PyTorch OIHW weight -> transpose(2, 3, 1, 0)).
    return 0.1 * jax.random.normal(key, (k, k, cin, cout), jnp.float32)


def init_params(key, in_planes, out_planes):
    c1 = out_planes // 2
    c2 = out_planes // 4
    keys = jax.random.split(key, 8)
    p = {}
    p["s1"], p["b1"] = _bn_folded(keys[0], in_planes)
    p["w1"] = _conv_w(keys[1], 3, in_planes, c1)
    p["s2"], p["b2"] = _bn_folded(keys[2], c1)
    p["w2"] = _conv_w(keys[3], 3, c1, c2)
    p["s3"], p["b3"] = _bn_folded(keys[4], c2)
    p["w3"] = _conv_w(keys[5], 3, c2, c2)
    if in_planes != out_planes:
        p["sd"], p["bd"] = _bn_folded(keys[6], in_planes)
        p["wd"] = _conv_w(keys[7], 1, in_planes, out_planes)
    else:
        p["sd"] = p["bd"] = p["wd"] = None
    return p


# ------------------------------------ main -------------------------------------

if __name__ == "__main__":
    N, H, W = 2, 16, 16
    key = jax.random.PRNGKey(0)

    # Case 1: in != out (downsample path).  Case 2: in == out (identity residual).
    for in_planes, out_planes in [(4, 8), (8, 8)]:
        key, kx, kp = jax.random.split(key, 3)
        x = jax.random.normal(kx, (N, in_planes, H, W), jnp.float32)   # NCHW
        params = init_params(kp, in_planes, out_planes)

        out = jax.block_until_ready(conv_block_forward(x, params))
        ref = jax.block_until_ready(conv_block_reference(x, params))

        assert out.shape == (N, out_planes, H, W), out.shape
        # Tolerance covers bf16 MXU operands (matches TPU default conv precision).
        assert jnp.allclose(out, ref, rtol=5e-3, atol=5e-3), \
            float(jnp.max(jnp.abs(out - ref)))

    print("KERNEL_OK")
</pallas_src>

<mosaic_0001>
module attributes {stable_mosaic.version = 11 : i64} {
  func.func @kernel(%arg0: i32, %arg1: memref<8x512xf32, #tpu.memory_space<vmem>>, %arg2: memref<9x512xf32, #tpu.memory_space<vmem>>, %arg3: memref<64x1xf32, #tpu.memory_space<vmem>>, %arg4: memref<8x72xbf16, #tpu.memory_space<vmem>>, %arg5: memref<8x72xbf16, #tpu.memory_space<vmem>>, %arg6: memref<8x72xbf16, #tpu.memory_space<vmem>>, %arg7: memref<24x8xbf16, #tpu.memory_space<vmem>>, %arg8: memref<24x512xf32, #tpu.memory_space<vmem>>) attributes {dimension_semantics = [#tpu.dimension_semantics<parallel>], iteration_bounds = array<i64: 1>, scalar_prefetch = 0 : i64, scratch_operands = 0 : i64, tpu.core_type = #tpu.core_type<tc>, window_params = [{transform_indices = @transform_0, window_bounds = array<i64: 8, 512>}, {pipeline_mode = #tpu.pipeline_mode<synchronous>, transform_indices = @transform_1, window_bounds = array<i64: 9, 512>}, {pipeline_mode = #tpu.pipeline_mode<synchronous>, transform_indices = @transform_2, window_bounds = array<i64: 64, 1>}, {pipeline_mode = #tpu.pipeline_mode<synchronous>, transform_indices = @transform_3, window_bounds = array<i64: 8, 72>}, {pipeline_mode = #tpu.pipeline_mode<synchronous>, transform_indices = @transform_4, window_bounds = array<i64: 8, 72>}, {pipeline_mode = #tpu.pipeline_mode<synchronous>, transform_indices = @transform_5, window_bounds = array<i64: 8, 72>}, {pipeline_mode = #tpu.pipeline_mode<synchronous>, transform_indices = @transform_6, window_bounds = array<i64: 24, 8>}, {transform_indices = @transform_7, window_bounds = array<i64: 24, 512>}]} {
    %c0 = arith.constant 0 : index
    %c0_0 = arith.constant 0 : index
    %0 = vector.load %arg1[%c0, %c0_0] : memref<8x512xf32, #tpu.memory_space<vmem>>, vector<8x512xf32>
    %c0_1 = arith.constant 0 : index
    %c0_2 = arith.constant 0 : index
    %1 = vector.load %arg2[%c0_1, %c0_2] : memref<9x512xf32, #tpu.memory_space<vmem>>, vector<9x512xf32>
    %c0_3 = arith.constant 0 : index
    %c0_4 = arith.constant 0 : index
    %2 = vector.load %arg3[%c0_3, %c0_4] : memref<64x1xf32, #tpu.memory_space<vmem>>, vector<8x1xf32>
    %c8 = arith.constant 8 : index
    %c0_5 = arith.constant 0 : index
    %3 = vector.load %arg3[%c8, %c0_5] : memref<64x1xf32, #tpu.memory_space<vmem>>, vector<8x1xf32>
    %4 = vector.broadcast %2 : vector<8x1xf32> to vector<8x512xf32>
    %5 = arith.mulf %0, %4 : vector<8x512xf32>
    %6 = vector.broadcast %3 : vector<8x1xf32> to vector<8x512xf32>
    %7 = arith.addf %5, %6 : vector<8x512xf32>
    %cst = arith.constant 0.000000e+00 : f32
    %8 = vector.broadcast %cst : f32 to vector<8x512xf32>
    %9 = arith.maximumf %7, %8 : vector<8x512xf32>
    %c17_i32 = arith.constant 17 : i32
    %10 = tpu.dynamic_rotate %9 by %c17_i32 dim 1 : vector<8x512xf32>, i32 -> vector<8x512xf32>
    %11 = vector.extract_strided_slice %1 {offsets = [0, 0], sizes = [1, 512], strides = [1, 1]} : vector<9x512xf32> to vector<1x512xf32>
    %12 = vector.broadcast %11 : vector<1x512xf32> to vector<8x512xf32>
    %13 = arith.mulf %10, %12 : vector<8x512xf32>
    %c16_i32 = arith.constant 16 : i32
    %14 = tpu.dynamic_rotate %9 by %c16_i32 dim 1 : vector<8x512xf32>, i32 -> vector<8x512xf32>
    %15 = vector.extract_strided_slice %1 {offsets = [1, 0], sizes = [1, 512], strides = [1, 1]} : vector<9x512xf32> to vector<1x512xf32>
    %16 = vector.broadcast %15 : vector<1x512xf32> to vector<8x512xf32>
    %17 = arith.mulf %14, %16 : vector<8x512xf32>
    %c15_i32 = arith.constant 15 : i32
    %18 = tpu.dynamic_rotate %9 by %c15_i32 dim 1 : vector<8x512xf32>, i32 -> vector<8x512xf32>
    %19 = vector.extract_strided_slice %1 {offsets = [2, 0], sizes = [1, 512], strides = [1, 1]} : vector<9x512xf32> to vector<1x512xf32>
    %20 = vector.broadcast %19 : vector<1x512xf32> to vector<8x512xf32>
    %21 = arith.mulf %18, %20 : vector<8x512xf32>
    %c1_i32 = arith.constant 1 : i32
    %22 = tpu.dynamic_rotate %9 by %c1_i32 dim 1 : vector<8x512xf32>, i32 -> vector<8x512xf32>
    %23 = vector.extract_strided_slice %1 {offsets = [3, 0], sizes = [1, 512], strides = [1, 1]} : vector<9x512xf32> to vector<1x512xf32>
    %24 = vector.broadcast %23 : vector<1x512xf32> to vector<8x512xf32>
    %25 = arith.mulf %22, %24 : vector<8x512xf32>
    %c511_i32 = arith.constant 511 : i32
    %26 = tpu.dynamic_rotate %9 by %c511_i32 dim 1 : vector<8x512xf32>, i32 -> vector<8x512xf32>
    %27 = vector.extract_strided_slice %1 {offsets = [5, 0], sizes = [1, 512], strides = [1, 1]} : vector<9x512xf32> to vector<1x512xf32>
    %28 = vector.broadcast %27 : vector<1x512xf32> to vector<8x512xf32>
    %29 = arith.mulf %26, %28 : vector<8x512xf32>
    %c497_i32 = arith.constant 497 : i32
    %30 = tpu.dynamic_rotate %9 by %c497_i32 dim 1 : vector<8x512xf32>, i32 -> vector<8x512xf32>
    %31 = vector.extract_strided_slice %1 {offsets = [6, 0], sizes = [1, 512], strides = [1, 1]} : vector<9x512xf32> to vector<1x512xf32>
    %32 = vector.broadcast %31 : vector<1x512xf32> to vector<8x512xf32>
    %33 = arith.mulf %30, %32 : vector<8x512xf32>
    %c496_i32 = arith.constant 496 : i32
    %34 = tpu.dynamic_rotate %9 by %c496_i32 dim 1 : vector<8x512xf32>, i32 -> vector<8x512xf32>
    %35 = vector.extract_strided_slice %1 {offsets = [7, 0], sizes = [1, 512], strides = [1, 1]} : vector<9x512xf32> to vector<1x512xf32>
    %36 = vector.broadcast %35 : vector<1x512xf32> to vector<8x512xf32>
    %37 = arith.mulf %34, %36 : vector<8x512xf32>
    %c495_i32 = arith.constant 495 : i32
    %38 = tpu.dynamic_rotate %9 by %c495_i32 dim 1 : vector<8x512xf32>, i32 -> vector<8x512xf32>
    %39 = vector.extract_strided_slice %1 {offsets = [8, 0], sizes = [1, 512], strides = [1, 1]} : vector<9x512xf32> to vector<1x512xf32>
    %40 = vector.broadcast %39 : vector<1x512xf32> to vector<8x512xf32>
    %41 = arith.mulf %38, %40 : vector<8x512xf32>
    %42 = tpu.concatenate %13, %17, %21, %25, %9, %29, %33, %37, %41 in 0 : vector<8x512xf32>, vector<8x512xf32>, vector<8x512xf32>, vector<8x512xf32>, vector<8x512xf32>, vector<8x512xf32>, vector<8x512xf32>, vector<8x512xf32>, vector<8x512xf32> -> vector<72x512xf32>
    %43 = arith.truncf %42 : vector<72x512xf32> to vector<72x512xbf16>
    %c0_6 = arith.constant 0 : index
    %c0_7 = arith.constant 0 : index
    %44 = vector.load %arg4[%c0_6, %c0_7] : memref<8x72xbf16, #tpu.memory_space<vmem>>, vector<8x72xbf16>
    %cst_8 = arith.constant dense<0.000000e+00> : vector<8x512xf32>
    %45 = tpu.matmul %44, %43, %cst_8 {dimension_numbers = #tpu.dot_dimension_numbers<[1], [0], [0], [1], [0, 0, 1, 1], [], []>} : vector<8x72xbf16>, vector<72x512xbf16>, vector<8x512xf32> -> vector<8x512xf32>
    %c16 = arith.constant 16 : index
    %c0_9 = arith.constant 0 : index
    %46 = vector.load %arg3[%c16, %c0_9] : memref<64x1xf32, #tpu.memory_space<vmem>>, vector<8x1xf32>
    %c24 = arith.constant 24 : index
    %c0_10 = arith.constant 0 : index
    %47 = vector.load %arg3[%c24, %c0_10] : memref<64x1xf32, #tpu.memory_space<vmem>>, vector<8x1xf32>
    %48 = vector.broadcast %46 : vector<8x1xf32> to vector<8x512xf32>
    %49 = arith.mulf %45, %48 : vector<8x512xf32>
    %50 = vector.broadcast %47 : vector<8x1xf32> to vector<8x512xf32>
    %51 = arith.addf %49, %50 : vector<8x512xf32>
    %cst_11 = arith.constant 0.000000e+00 : f32
    %52 = vector.broadcast %cst_11 : f32 to vector<8x512xf32>
    %53 = arith.maximumf %51, %52 : vector<8x512xf32>
    %c17_i32_12 = arith.constant 17 : i32
    %54 = tpu.dynamic_rotate %53 by %c17_i32_12 dim 1 : vector<8x512xf32>, i32 -> vector<8x512xf32>
    %55 = vector.extract_strided_slice %1 {offsets = [0, 0], sizes = [1, 512], strides = [1, 1]} : vector<9x512xf32> to vector<1x512xf32>
    %56 = vector.broadcast %55 : vector<1x512xf32> to vector<8x512xf32>
    %57 = arith.mulf %54, %56 : vector<8x512xf32>
    %c16_i32_13 = arith.constant 16 : i32
    %58 = tpu.dynamic_rotate %53 by %c16_i32_13 dim 1 : vector<8x512xf32>, i32 -> vector<8x512xf32>
    %59 = vector.extract_strided_slice %1 {offsets = [1, 0], sizes = [1, 512], strides = [1, 1]} : vector<9x512xf32> to vector<1x512xf32>
    %60 = vector.broadcast %59 : vector<1x512xf32> to vector<8x512xf32>
    %61 = arith.mulf %58, %60 : vector<8x512xf32>
    %c15_i32_14 = arith.constant 15 : i32
    %62 = tpu.dynamic_rotate %53 by %c15_i32_14 dim 1 : vector<8x512xf32>, i32 -> vector<8x512xf32>
    %63 = vector.extract_strided_slice %1 {offsets = [2, 0], sizes = [1, 512], strides = [1, 1]} : vector<9x512xf32> to vector<1x512xf32>
    %64 = vector.broadcast %63 : vector<1x512xf32> to vector<8x512xf32>
    %65 = arith.mulf %62, %64 : vector<8x512xf32>
    %c1_i32_15 = arith.constant 1 : i32
    %66 = tpu.dynamic_rotate %53 by %c1_i32_15 dim 1 : vector<8x512xf32>, i32 -> vector<8x512xf32>
    %67 = vector.extract_strided_slice %1 {offsets = [3, 0], sizes = [1, 512], strides = [1, 1]} : vector<9x512xf32> to vector<1x512xf32>
    %68 = vector.broadcast %67 : vector<1x512xf32> to vector<8x512xf32>
    %69 = arith.mulf %66, %68 : vector<8x512xf32>
    %c511_i32_16 = arith.constant 511 : i32
    %70 = tpu.dynamic_rotate %53 by %c511_i32_16 dim 1 : vector<8x512xf32>, i32 -> vector<8x512xf32>
    %71 = vector.extract_strided_slice %1 {offsets = [5, 0], sizes = [1, 512], strides = [1, 1]} : vector<9x512xf32> to vector<1x512xf32>
    %72 = vector.broadcast %71 : vector<1x512xf32> to vector<8x512xf32>
    %73 = arith.mulf %70, %72 : vector<8x512xf32>
    %c497_i32_17 = arith.constant 497 : i32
    %74 = tpu.dynamic_rotate %53 by %c497_i32_17 dim 1 : vector<8x512xf32>, i32 -> vector<8x512xf32>
    %75 = vector.extract_strided_slice %1 {offsets = [6, 0], sizes = [1, 512], strides = [1, 1]} : vector<9x512xf32> to vector<1x512xf32>
    %76 = vector.broadcast %75 : vector<1x512xf32> to vector<8x512xf32>
    %77 = arith.mulf %74, %76 : vector<8x512xf32>
    %c496_i32_18 = arith.constant 496 : i32
    %78 = tpu.dynamic_rotate %53 by %c496_i32_18 dim 1 : vector<8x512xf32>, i32 -> vector<8x512xf32>
    %79 = vector.extract_strided_slice %1 {offsets = [7, 0], sizes = [1, 512], strides = [1, 1]} : vector<9x512xf32> to vector<1x512xf32>
    %80 = vector.broadcast %79 : vector<1x512xf32> to vector<8x512xf32>
    %81 = arith.mulf %78, %80 : vector<8x512xf32>
    %c495_i32_19 = arith.constant 495 : i32
    %82 = tpu.dynamic_rotate %53 by %c495_i32_19 dim 1 : vector<8x512xf32>, i32 -> vector<8x512xf32>
    %83 = vector.extract_strided_slice %1 {offsets = [8, 0], sizes = [1, 512], strides = [1, 1]} : vector<9x512xf32> to vector<1x512xf32>
    %84 = vector.broadcast %83 : vector<1x512xf32> to vector<8x512xf32>
    %85 = arith.mulf %82, %84 : vector<8x512xf32>
    %86 = tpu.concatenate %57, %61, %65, %69, %53, %73, %77, %81, %85 in 0 : vector<8x512xf32>, vector<8x512xf32>, vector<8x512xf32>, vector<8x512xf32>, vector<8x512xf32>, vector<8x512xf32>, vector<8x512xf32>, vector<8x512xf32>, vector<8x512xf32> -> vector<72x512xf32>
    %87 = arith.truncf %86 : vector<72x512xf32> to vector<72x512xbf16>
    %c0_20 = arith.constant 0 : index
    %c0_21 = arith.constant 0 : index
    %88 = vector.load %arg5[%c0_20, %c0_21] : memref<8x72xbf16, #tpu.memory_space<vmem>>, vector<8x72xbf16>
    %cst_22 = arith.constant dense<0.000000e+00> : vector<8x512xf32>
    %89 = tpu.matmul %88, %87, %cst_22 {dimension_numbers = #tpu.dot_dimension_numbers<[1], [0], [0], [1], [0, 0, 1, 1], [], []>} : vector<8x72xbf16>, vector<72x512xbf16>, vector<8x512xf32> -> vector<8x512xf32>
    %c32 = arith.constant 32 : index
    %c0_23 = arith.constant 0 : index
    %90 = vector.load %arg3[%c32, %c0_23] : memref<64x1xf32, #tpu.memory_space<vmem>>, vector<8x1xf32>
    %c40 = arith.constant 40 : index
    %c0_24 = arith.constant 0 : index
    %91 = vector.load %arg3[%c40, %c0_24] : memref<64x1xf32, #tpu.memory_space<vmem>>, vector<8x1xf32>
    %92 = vector.broadcast %90 : vector<8x1xf32> to vector<8x512xf32>
    %93 = arith.mulf %89, %92 : vector<8x512xf32>
    %94 = vector.broadcast %91 : vector<8x1xf32> to vector<8x512xf32>
    %95 = arith.addf %93, %94 : vector<8x512xf32>
    %cst_25 = arith.constant 0.000000e+00 : f32
    %96 = vector.broadcast %cst_25 : f32 to vector<8x512xf32>
    %97 = arith.maximumf %95, %96 : vector<8x512xf32>
    %c17_i32_26 = arith.constant 17 : i32
    %98 = tpu.dynamic_rotate %97 by %c17_i32_26 dim 1 : vector<8x512xf32>, i32 -> vector<8x512xf32>
    %99 = vector.extract_strided_slice %1 {offsets = [0, 0], sizes = [1, 512], strides = [1, 1]} : vector<9x512xf32> to vector<1x512xf32>
    %100 = vector.broadcast %99 : vector<1x512xf32> to vector<8x512xf32>
    %101 = arith.mulf %98, %100 : vector<8x512xf32>
    %c16_i32_27 = arith.constant 16 : i32
    %102 = tpu.dynamic_rotate %97 by %c16_i32_27 dim 1 : vector<8x512xf32>, i32 -> vector<8x512xf32>
    %103 = vector.extract_strided_slice %1 {offsets = [1, 0], sizes = [1, 512], strides = [1, 1]} : vector<9x512xf32> to vector<1x512xf32>
    %104 = vector.broadcast %103 : vector<1x512xf32> to vector<8x512xf32>
    %105 = arith.mulf %102, %104 : vector<8x512xf32>
    %c15_i32_28 = arith.constant 15 : i32
    %106 = tpu.dynamic_rotate %97 by %c15_i32_28 dim 1 : vector<8x512xf32>, i32 -> vector<8x512xf32>
    %107 = vector.extract_strided_slice %1 {offsets = [2, 0], sizes = [1, 512], strides = [1, 1]} : vector<9x512xf32> to vector<1x512xf32>
    %108 = vector.broadcast %107 : vector<1x512xf32> to vector<8x512xf32>
    %109 = arith.mulf %106, %108 : vector<8x512xf32>
    %c1_i32_29 = arith.constant 1 : i32
    %110 = tpu.dynamic_rotate %97 by %c1_i32_29 dim 1 : vector<8x512xf32>, i32 -> vector<8x512xf32>
    %111 = vector.extract_strided_slice %1 {offsets = [3, 0], sizes = [1, 512], strides = [1, 1]} : vector<9x512xf32> to vector<1x512xf32>
    %112 = vector.broadcast %111 : vector<1x512xf32> to vector<8x512xf32>
    %113 = arith.mulf %110, %112 : vector<8x512xf32>
    %c511_i32_30 = arith.constant 511 : i32
    %114 = tpu.dynamic_rotate %97 by %c511_i32_30 dim 1 : vector<8x512xf32>, i32 -> vector<8x512xf32>
    %115 = vector.extract_strided_slice %1 {offsets = [5, 0], sizes = [1, 512], strides = [1, 1]} : vector<9x512xf32> to vector<1x512xf32>
    %116 = vector.broadcast %115 : vector<1x512xf32> to vector<8x512xf32>
    %117 = arith.mulf %114, %116 : vector<8x512xf32>
    %c497_i32_31 = arith.constant 497 : i32
    %118 = tpu.dynamic_rotate %97 by %c497_i32_31 dim 1 : vector<8x512xf32>, i32 -> vector<8x512xf32>
    %119 = vector.extract_strided_slice %1 {offsets = [6, 0], sizes = [1, 512], strides = [1, 1]} : vector<9x512xf32> to vector<1x512xf32>
    %120 = vector.broadcast %119 : vector<1x512xf32> to vector<8x512xf32>
    %121 = arith.mulf %118, %120 : vector<8x512xf32>
    %c496_i32_32 = arith.constant 496 : i32
    %122 = tpu.dynamic_rotate %97 by %c496_i32_32 dim 1 : vector<8x512xf32>, i32 -> vector<8x512xf32>
    %123 = vector.extract_strided_slice %1 {offsets = [7, 0], sizes = [1, 512], strides = [1, 1]} : vector<9x512xf32> to vector<1x512xf32>
    %124 = vector.broadcast %123 : vector<1x512xf32> to vector<8x512xf32>
    %125 = arith.mulf %122, %124 : vector<8x512xf32>
    %c495_i32_33 = arith.constant 495 : i32
    %126 = tpu.dynamic_rotate %97 by %c495_i32_33 dim 1 : vector<8x512xf32>, i32 -> vector<8x512xf32>
    %127 = vector.extract_strided_slice %1 {offsets = [8, 0], sizes = [1, 512], strides = [1, 1]} : vector<9x512xf32> to vector<1x512xf32>
    %128 = vector.broadcast %127 : vector<1x512xf32> to vector<8x512xf32>
    %129 = arith.mulf %126, %128 : vector<8x512xf32>
    %130 = tpu.concatenate %101, %105, %109, %113, %97, %117, %121, %125, %129 in 0 : vector<8x512xf32>, vector<8x512xf32>, vector<8x512xf32>, vector<8x512xf32>, vector<8x512xf32>, vector<8x512xf32>, vector<8x512xf32>, vector<8x512xf32>, vector<8x512xf32> -> vector<72x512xf32>
    %131 = arith.truncf %130 : vector<72x512xf32> to vector<72x512xbf16>
    %c0_34 = arith.constant 0 : index
    %c0_35 = arith.constant 0 : index
    %132 = vector.load %arg6[%c0_34, %c0_35] : memref<8x72xbf16, #tpu.memory_space<vmem>>, vector<8x72xbf16>
    %cst_36 = arith.constant dense<0.000000e+00> : vector<8x512xf32>
    %133 = tpu.matmul %132, %131, %cst_36 {dimension_numbers = #tpu.dot_dimension_numbers<[1], [0], [0], [1], [0, 0, 1, 1], [], []>} : vector<8x72xbf16>, vector<72x512xbf16>, vector<8x512xf32> -> vector<8x512xf32>
    %c48 = arith.constant 48 : index
    %c0_37 = arith.constant 0 : index
    %134 = vector.load %arg3[%c48, %c0_37] : memref<64x1xf32, #tpu.memory_space<vmem>>, vector<8x1xf32>
    %c56 = arith.constant 56 : index
    %c0_38 = arith.constant 0 : index
    %135 = vector.load %arg3[%c56, %c0_38] : memref<64x1xf32, #tpu.memory_space<vmem>>, vector<8x1xf32>
    %136 = vector.broadcast %134 : vector<8x1xf32> to vector<8x512xf32>
    %137 = arith.mulf %0, %136 : vector<8x512xf32>
    %138 = vector.broadcast %135 : vector<8x1xf32> to vector<8x512xf32>
    %139 = arith.addf %137, %138 : vector<8x512xf32>
    %cst_39 = arith.constant 0.000000e+00 : f32
    %140 = vector.broadcast %cst_39 : f32 to vector<8x512xf32>
    %141 = arith.maximumf %139, %140 : vector<8x512xf32>
    %142 = arith.truncf %141 : vector<8x512xf32> to vector<8x512xbf16>
    %c0_40 = arith.constant 0 : index
    %c0_41 = arith.constant 0 : index
    %143 = vector.load %arg7[%c0_40, %c0_41] : memref<24x8xbf16, #tpu.memory_space<vmem>>, vector<24x8xbf16>
    %cst_42 = arith.constant dense<0.000000e+00> : vector<24x512xf32>
    %144 = tpu.matmul %143, %142, %cst_42 {dimension_numbers = #tpu.dot_dimension_numbers<[1], [0], [0], [1], [0, 0, 1, 1], [], []>} : vector<24x8xbf16>, vector<8x512xbf16>, vector<24x512xf32> -> vector<24x512xf32>
    %145 = vector.extract_strided_slice %144 {offsets = [0, 0], sizes = [8, 512], strides = [1, 1]} : vector<24x512xf32> to vector<8x512xf32>
    %146 = vector.extract_strided_slice %144 {offsets = [8, 0], sizes = [8, 512], strides = [1, 1]} : vector<24x512xf32> to vector<8x512xf32>
    %147 = vector.extract_strided_slice %144 {offsets = [16, 0], sizes = [8, 512], strides = [1, 1]} : vector<24x512xf32> to vector<8x512xf32>
    %148 = arith.addf %45, %145 : vector<8x512xf32>
    %c0_43 = arith.constant 0 : index
    %c0_44 = arith.constant 0 : index
    %149 = vector.load %arg8[%c0_43, %c0_44] : memref<24x512xf32, #tpu.memory_space<vmem>>, vector<8x512xf32>
    tpu.vector_store %arg8[%c0_43, %c0_44], %148 {strides = array<i32>} : memref<24x512xf32, #tpu.memory_space<vmem>>, vector<8x512xf32>,
    %150 = arith.addf %89, %146 : vector<8x512xf32>
    %c8_45 = arith.constant 8 : index
    %c0_46 = arith.constant 0 : index
    %151 = vector.load %arg8[%c8_45, %c0_46] : memref<24x512xf32, #tpu.memory_space<vmem>>, vector<8x512xf32>
    tpu.vector_store %arg8[%c8_45, %c0_46], %150 {strides = array<i32>} : memref<24x512xf32, #tpu.memory_space<vmem>>, vector<8x512xf32>,
    %152 = arith.addf %133, %147 : vector<8x512xf32>
    %c16_47 = arith.constant 16 : index
    %c0_48 = arith.constant 0 : index
    %153 = vector.load %arg8[%c16_47, %c0_48] : memref<24x512xf32, #tpu.memory_space<vmem>>, vector<8x512xf32>
    tpu.vector_store %arg8[%c16_47, %c0_48], %152 {strides = array<i32>} : memref<24x512xf32, #tpu.memory_space<vmem>>, vector<8x512xf32>,
    return
  }
  func.func @transform_0(%arg0: i32) -> (i32, i32) {
    %c0_i32 = arith.constant 0 : i32
    %c0_i32_0 = arith.constant 0 : i32
    return %c0_i32, %arg0 : i32, i32
  }
  func.func @transform_1(%arg0: i32) -> (i32, i32) {
    %c0_i32 = arith.constant 0 : i32
    %c0_i32_0 = arith.constant 0 : i32
    %c0_i32_1 = arith.constant 0 : i32
    return %c0_i32, %c0_i32_0 : i32, i32
  }
  func.func @transform_2(%arg0: i32) -> (i32, i32) {
    %c0_i32 = arith.constant 0 : i32
    %c0_i32_0 = arith.constant 0 : i32
    %c0_i32_1 = arith.constant 0 : i32
    return %c0_i32, %c0_i32_0 : i32, i32
  }
  func.func @transform_3(%arg0: i32) -> (i32, i32) {
    %c0_i32 = arith.constant 0 : i32
    %c0_i32_0 = arith.constant 0 : i32
    %c0_i32_1 = arith.constant 0 : i32
    return %c0_i32, %c0_i32_0 : i32, i32
  }
  func.func @transform_4(%arg0: i32) -> (i32, i32) {
    %c0_i32 = arith.constant 0 : i32
    %c0_i32_0 = arith.constant 0 : i32
    %c0_i32_1 = arith.constant 0 : i32
    return %c0_i32, %c0_i32_0 : i32, i32
  }
  func.func @transform_5(%arg0: i32) -> (i32, i32) {
    %c0_i32 = arith.constant 0 : i32
    %c0_i32_0 = arith.constant 0 : i32
    %c0_i32_1 = arith.constant 0 : i32
    return %c0_i32, %c0_i32_0 : i32, i32
  }
  func.func @transform_6(%arg0: i32) -> (i32, i32) {
    %c0_i32 = arith.constant 0 : i32
    %c0_i32_0 = arith.constant 0 : i32
    %c0_i32_1 = arith.constant 0 : i32
    return %c0_i32, %c0_i32_0 : i32, i32
  }
  func.func @transform_7(%arg0: i32) -> (i32, i32) {
    %c0_i32 = arith.constant 0 : i32
    %c0_i32_0 = arith.constant 0 : i32
    return %c0_i32, %arg0 : i32, i32
  }
}

</mosaic_0001>

<bundles_post_ra>
// kernel: tpu_custom_call.1
= control target key start
LH: loop header
LB: loop body
LE: loop exit
PB: predicated region body
PF: predicated region fallthrough
CT: control target
= control target key end

     0   :  { %12 = vsyncpa [#allocation3], 0  ;;  %s2123_s0 = inlined_call_operand.hbm [shape: f32[8,512], index: 0, kind: input, shape index: {}]   ;;  %s2124_s1 = inlined_call_operand.vmem [shape: f32[9,512], index: 1, kind: input, shape index: {}]   ;;  %s2125_s2 = inlined_call_operand.vmem [shape: f32[64,1], index: 2, kind: input, shape index: {}]   ;;  %s2126_s3 = inlined_call_operand.vmem [shape: bf16[8,72], index: 3, kind: input, shape index: {}]   ;;  %s2127_s4 = inlined_call_operand.vmem [shape: bf16[8,72], index: 4, kind: input, shape index: {}]   ;;  %s2128_s5 = inlined_call_operand.vmem [shape: bf16[8,72], index: 5, kind: input, shape index: {}]   ;;  %s2129_s6 = inlined_call_operand.vmem [shape: bf16[24,8], index: 6, kind: input, shape index: {}]   ;;  %s2130_s7 = inlined_call_operand.hbm [shape: f32[24,512], index: 7, kind: output, shape index: {}]  }
   0x1   :  { %13 = vsyncpa [#allocation4], 0  ;;  %s1288_s24 = smov [#allocation2]  }
   0x2   :  { %s20_s25 = sshll.u32 %s1288_s24, 4  ;;  %s21_s25 = int_to_ptr.vmem [resolvable:$true] %s20_s25 }
   0x3   :  { %s1252_s26 = scalar_lea.vmem %s21_s25, 512  ;;  %p1257_p1 = scmp.lt.s32.totalorder %s21_s25, %s21_s25 }
   0x4   :  { %p1253_p0 = scmp.ne.s32.totalorder %s21_s25, %s1252_s26  ;;  %p1258_p2 = scmp.lt.s32.totalorder %s1252_s26, %s1252_s26 }
   0x6   :  { %p1259_p3 = por %p1258_p2, %p1257_p1 }
   0x8   :  { %p1260_p4 = pnand %p1259_p3, %p1253_p0 }
   0xa   :  { %1263 = shalt.err (!%p1260_p4)
}
   0xb   :  { %23 = dma.hbm_to_vmem [thread:$0]  %s2123_s0, 512, %s21_s25, [#allocation3]  }
   0xc   :  { %1284 = dma.done.wait [#allocation3], 512  }
   0xd   :  { %1285 = vsyncadd [#allocation3], 4294966784  ;;  %v1289_v0 = vmov 0   ;;  %v52_v1 = vld [vmem:[%s2125_s2] sm:$0xff]  ;;  %v53_v2 = vld [vmem:[%s2125_s2 + $0x8] sm:$0xff]  ;;  %s1290_s0 = smov 111   ;;  %v84_v23 = vlaneseq }
   0xe   :  { %1236 = vset.pattern.permute.xlu0 %v1289_v0  ;;  %412 = vmatprep.mubr.bf16.mxu0 %v1289_v0  ;;  %v1354_v4 = vld [vmem:[#allocation2] sm:$0xff]  ;;  %v1356_v5 = vld [vmem:[#allocation2 + $0x10] sm:$0xff]  ;;  %v1358_v6 = vld [vmem:[#allocation2 + $0x8] sm:$0xff]  ;;  %s1291_s10 = smov 113   ;;  %s1292_s11 = smov 112   ;;  %vm367_vm1 = vcmask 1043456  }
   0xf   :  { %453 = vmatprep.mubr.bf16.mxu1 %v1289_v0  ;;  %1237 = vset.pattern.permute.xlu1 %v1289_v0  ;;  %v1363_v13 = vld [vmem:[#allocation2 + $0x18] sm:$0xff]  ;;  %s1293_s12 = smov 127   ;;  %s1294_s13 = smov 15   ;;  %v462_v21 = vld [vmem:[%s2125_s2 + $0x10] sm:$0xff]  ;;  %v1444_v24 = vand.u32 127, %v84_v23  ;;  %v1475_v42 = vshrl.u32 %v84_v23, 7 }
  0x10   :  { %56 = vperm.xlu0 %1236, %v52_v1   ;;  %s1295_s14 = smov 1   ;;  %s1296_s15 = smov 17   ;;  %v463_v22 = vld [vmem:[%s2125_s2 + $0x18] sm:$0xff]  ;;  %v1450_v27 = vld [vmem:[%s2124_s1 + $0x28] ss:$0 sm:$0xff]  ;;  %v1487_v52 = vld [vmem:[%s2124_s1] sm:$0xff] }
  0x11   :  { %s1297_s16 = smov 16   ;;  %vm317_vm0 = vcmp.lt.s32.totalorder %v1444_v24, 111  ;;  %v1455_v28 = vld [vmem:[%s2124_s1 + $0x20] ss:$0 sm:$0xff]  ;;  %v1466_v35 = vld [vmem:[%s2124_s1 + $0x38] ss:$0 sm:$0xff] }
  0x12   :  { %v1471_v36 = vld [vmem:[%s2124_s1 + $0x30] ss:$0 sm:$0xff]  ;;  %v258_v51 = vsub.s32 6, %v1475_v42  ;;  %v291_v54 = vsub.s32 7, %v1475_v42  ;;  %v1495_v55 = vld [vmem:[%s2124_s1 + $0x8] sm:$0xff]  ;;  %vm251_vm2 = vcmp.lt.s32.totalorder %v1444_v24, 113 }
  0x13   :  { %v1504_v59 = vld [vmem:[%s2124_s1 + $0x10] sm:$0xff]  ;;  %v1509_v60 = vld [vmem:[%s2124_s1 + $0x18] sm:$0xff]  ;;  %vm284_vm3 = vcmp.lt.s32.totalorder %v1444_v24, 112  ;;  %vm218_vm4 = vcmp.lt.s32.totalorder %v1444_v24, 127  ;;  %vm152_vm5 = vcmp.lt.s32.totalorder %v1444_v24, 15  ;;  %vm185_vm6 = vcmp.lt.s32.totalorder %v1444_v24, 1 }
  0x14   :  { %65 = vperm.xlu0 %1236, %v53_v2   ;;  %v1499_v58 = vrot.slane %v1487_v52, %v258_v51  ;;  %v1512_v61 = vrot.slane %v1495_v55, %v258_v51  ;;  %v1516_v62 = vrot.slane %v1487_v52, %v291_v54  ;;  %v1519_v63 = vrot.slane %v1495_v55, %v291_v54  ;;  %s1298_s18 = smov [#allocation5]  }
  0x15   :  { %vm86_vm7 = vcmp.lt.s32.totalorder %v1444_v24, 17  ;;  %vm119_vm8 = vcmp.lt.s32.totalorder %v1444_v24, 16  ;;  %vm363_vm9 = vcmask 588800   ;;  %vm944_vm10 = vcmask 64512   ;;  %v904_v24 = vld [vmem:[%s2128_s5] sm:$0xf] }
  0x16   :  { %s1187_s19 = sshll.u32 %s1298_s18, 4  ;;  %s1188_s19 = int_to_ptr.vmem [resolvable:$true] %s1187_s19 }
  0x17   :  { %s1264_s5 = scalar_lea.vmem %s1188_s19, 1536  ;;  %p1269_p6 = scmp.lt.s32.totalorder %s1188_s19, %s1188_s19 }
  0x18   :  { %p1265_p5 = scmp.ne.s32.totalorder %s1188_s19, %s1264_s5  ;;  %p1270_p7 = scmp.lt.s32.totalorder %s1264_s5, %s1264_s5 }
  0x1a   :  { %p1271_p8 = por %p1270_p7, %p1269_p6 }
  0x1c   :  { %p1272_p9 = pnand %p1271_p8, %p1265_p5 }
  0x8b   :  { %v57_v3 = vpop.permute.xlu0 %56 }
  0x8c   :  { %v59_v7 = vmul.f32 %v57_v3, %v1354_v4  ;;  %v61_v8 = vmul.f32 %v57_v3, %v1356_v5  ;;  %v60_v10 = vmul.f32 %v57_v3, %v1358_v6  ;;  %v62_v17 = vmul.f32 %v57_v3, %v1363_v13 }
  0x8d   :  { %v1526_v3 = vrot.slane %v1504_v59, %v258_v51 }
  0x8f   :  { %v66_v9 = vpop.permute.xlu0 %65 }
  0x90   :  { %v68_v11 = vadd.f32 %v66_v9, %v59_v7  ;;  %v70_v12 = vadd.f32 %v66_v9, %v61_v8  ;;  %v69_v14 = vadd.f32 %v66_v9, %v60_v10  ;;  %v71_v18 = vadd.f32 %v66_v9, %v62_v17 }
  0x91   :  { %v1529_v7 = vrot.slane %v1509_v60, %v258_v51  ;;  %v1532_v10 = vrot.slane %v1504_v59, %v291_v54  ;;  %v225_v17 = vsub.s32 5, %v1475_v42 }
  0x92   :  { %v1365_v15 = vmax.f32 %v68_v11, 0.0  ;;  %v1367_v16 = vmax.f32 %v70_v12, 0.0  ;;  %v1374_v19 = vmax.f32 %v69_v14, 0.0  ;;  %v1380_v20 = vmax.f32 %v71_v18, 0.0 }
  0x93   :  { %v1539_v14 = vrot.slane %v1509_v60, %v291_v54  ;;  %v1575_v54 = vrot.slane %v1509_v60, %v225_v17 }
  0x94   :  { %313 = vrot.lane.b32.xlu0 %v1367_v16, %s1290_s0  ;;  %309 = vrot.lane.b32.xlu1 %v1365_v15, %s1290_s0 }
  0x98   :  { %243 = vrot.lane.b32.xlu0 %v1365_v15, %s1291_s10  ;;  %311 = vrot.lane.b32.xlu1 %v1374_v19, %s1290_s0 }
  0x9c   :  { %247 = vrot.lane.b32.xlu0 %v1367_v16, %s1291_s10  ;;  %315 = vrot.lane.b32.xlu1 %v1380_v20, %s1290_s0 }
  0xa0   :  { %276 = vrot.lane.b32.xlu0 %v1365_v15, %s1292_s11  ;;  %245 = vrot.lane.b32.xlu1 %v1374_v19, %s1291_s10 }
  0xa4   :  { %280 = vrot.lane.b32.xlu0 %v1367_v16, %s1292_s11  ;;  %249 = vrot.lane.b32.xlu1 %v1380_v20, %s1291_s10 }
  0xa8   :  { %210 = vrot.lane.b32.xlu0 %v1365_v15, %s1293_s12  ;;  %278 = vrot.lane.b32.xlu1 %v1374_v19, %s1292_s11 }
  0xac   :  { %214 = vrot.lane.b32.xlu0 %v1367_v16, %s1293_s12  ;;  %282 = vrot.lane.b32.xlu1 %v1380_v20, %s1292_s11 }
  0xb0   :  { %144 = vrot.lane.b32.xlu0 %v1365_v15, %s1294_s13  ;;  %212 = vrot.lane.b32.xlu1 %v1374_v19, %s1293_s12 }
  0xb4   :  { %148 = vrot.lane.b32.xlu0 %v1367_v16, %s1294_s13  ;;  %216 = vrot.lane.b32.xlu1 %v1380_v20, %s1293_s12 }
  0xb8   :  { %177 = vrot.lane.b32.xlu0 %v1365_v15, %s1295_s14  ;;  %146 = vrot.lane.b32.xlu1 %v1374_v19, %s1294_s13 }
  0xbc   :  { %181 = vrot.lane.b32.xlu0 %v1367_v16, %s1295_s14  ;;  %150 = vrot.lane.b32.xlu1 %v1380_v20, %s1294_s13 }
  0xc0   :  { %76 = vrot.lane.b32.xlu0 %v1365_v15, %s1296_s15  ;;  %179 = vrot.lane.b32.xlu1 %v1374_v19, %s1295_s14 }
  0xc4   :  { %80 = vrot.lane.b32.xlu0 %v1367_v16, %s1296_s15  ;;  %183 = vrot.lane.b32.xlu1 %v1380_v20, %s1295_s14 }
  0xc8   :  { %111 = vrot.lane.b32.xlu0 %v1365_v15, %s1297_s16  ;;  %78 = vrot.lane.b32.xlu1 %v1374_v19, %s1296_s15 }
  0xcc   :  { %115 = vrot.lane.b32.xlu0 %v1367_v16, %s1297_s16  ;;  %82 = vrot.lane.b32.xlu1 %v1380_v20, %s1296_s15 }
  0xd0   :  { %466 = vperm.xlu0 %1236, %v462_v21   ;;  %113 = vrot.lane.b32.xlu1 %v1374_v19, %s1297_s16 }
  0xd4   :  { %117 = vrot.lane.b32.xlu1 %v1380_v20, %s1297_s16 }
  0xd8   :  { %475 = vperm.xlu1 %1237, %v463_v22  }
 0x106   :  { %v314_v25 = vpop.permute.xlu0 %313  ;;  %v310_v26 = vpop.permute.xlu1 %309 }
 0x10a   :  { %v244_v29 = vpop.permute.xlu0 %243  ;;  %v312_v30 = vpop.permute.xlu1 %311 }
 0x10b   :  { %v320_v31 = vsel %vm317_vm0, %v310_v26, %v312_v30  ;;  %v319_v32 = vsel %vm317_vm0, %v312_v30, %v314_v25 }
 0x10c   :  { %v339_v33 = vmul.f32 %v1450_v27, %v319_v32  ;;  %v338_v34 = vmul.f32 %v1455_v28, %v320_v31 }
 0x10e   :  { %v248_v37 = vpop.permute.xlu0 %247  ;;  %v316_v38 = vpop.permute.xlu1 %315  ;;  %v359_v39 = vpack.c.bf16 %v339_v33, %v339_v33  ;;  %v358_v40 = vpack.c.bf16 %v338_v34, %v338_v34 }
 0x10f   :  { %v318_v41 = vsel %vm317_vm0, %v314_v25, %v316_v38  ;;  %v321_v43 = vsel %vm317_vm0, %v316_v38, %v310_v26 }
 0x110   :  { %1203 = vmatprep.subr.msk.bf16.mxu0 %vm367_vm1, %v359_v39  ;;  %v369_v44 = vsel %vm367_vm1, %v358_v40, 0  ;;  %v341_v45 = vmul.f32 %v1466_v35, %v321_v43  ;;  %v340_v46 = vmul.f32 %v1471_v36, %v318_v41  ;;  %v1556_v39 = vrot.slane %v1487_v52, %v225_v17 }
 0x111   :  { %387 = vmatpush1.bf16.msra.mxu0 %v369_v44 }
 0x112   :  { %v277_v47 = vpop.permute.xlu0 %276  ;;  %v246_v48 = vpop.permute.xlu1 %245  ;;  %v361_v49 = vpack.c.bf16 %v341_v45, %v341_v45  ;;  %v360_v50 = vpack.c.bf16 %v340_v46, %v340_v46 }
 0x113   :  { %v253_v1 = vsel %vm251_vm2, %v246_v48, %v248_v37  ;;  %v254_v2 = vsel %vm251_vm2, %v244_v29, %v246_v48 }
 0x114   :  { %1205 = vmatprep.subr.msk.bf16.mxu1 %vm367_vm1, %v361_v49  ;;  %v375_v53 = vsel %vm367_vm1, %v360_v50, 0  ;;  %v272_v18 = vmul.f32 %v1499_v58, %v254_v2  ;;  %v273_v21 = vmul.f32 %v1512_v61, %v253_v1 }
 0x115   :  { %428 = vmatpush1.bf16.msra.mxu1 %v375_v53  ;;  %v1572_v53 = vrot.slane %v1504_v59, %v225_v17 }
 0x116   :  { %v281_v56 = vpop.permute.xlu0 %280  ;;  %v250_v57 = vpop.permute.xlu1 %249 }
 0x117   :  { %v252_v25 = vsel %vm251_vm2, %v248_v37, %v250_v57  ;;  %v255_v26 = vsel %vm251_vm2, %v250_v57, %v244_v29  ;;  %v1559_v37 = vrot.slane %v1495_v55, %v225_v17 }
 0x118   :  { %v274_v29 = vmul.f32 %v1526_v3, %v252_v25  ;;  %v275_v40 = vmul.f32 %v1529_v7, %v255_v26 }
 0x11a   :  { %v211_v8 = vpop.permute.xlu0 %210  ;;  %v279_v9 = vpop.permute.xlu1 %278 }
 0x11b   :  { %v286_v11 = vsel %vm284_vm3, %v279_v9, %v281_v56  ;;  %v287_v12 = vsel %vm284_vm3, %v277_v47, %v279_v9 }
 0x11c   :  { %v305_v22 = vmul.f32 %v1516_v62, %v287_v12  ;;  %v306_v23 = vmul.f32 %v1519_v63, %v286_v11 }
 0x11e   :  { %v215_v30 = vpop.permute.xlu0 %214  ;;  %v283_v31 = vpop.permute.xlu1 %282  ;;  %v355_v32 = vpack.c.bf16 %v306_v23, %v273_v21  ;;  %v354_v33 = vpack.c.bf16 %v305_v22, %v272_v18  ;;  %v192_v23 = vsub.s32 3, %v1475_v42 }
 0x11f   :  { %v285_v34 = vsel %vm284_vm3, %v281_v56, %v283_v31  ;;  %v288_v38 = vsel %vm284_vm3, %v283_v31, %v277_v47 }
 0x120   :  { %v307_v41 = vmul.f32 %v1532_v10, %v285_v34  ;;  %v308_v43 = vmul.f32 %v1539_v14, %v288_v38  ;;  %388 = vmatprep.subr.bf16.mxu0 %v355_v32  ;;  %v1606_v34 = vrot.slane %v1504_v59, %v192_v23 }
 0x121   :  { %389 = vmatpush1.bf16.msra.mxu0 %v354_v33 }
 0x122   :  { %v145_v44 = vpop.permute.xlu0 %144  ;;  %v213_v45 = vpop.permute.xlu1 %212  ;;  %v357_v46 = vpack.c.bf16 %v308_v43, %v275_v40  ;;  %v356_v47 = vpack.c.bf16 %v307_v41, %v274_v29  ;;  %v1611_v29 = vrot.slane %v1487_v52, %v192_v23 }
 0x123   :  { %v220_v48 = vsel %vm218_vm4, %v213_v45, %v215_v30  ;;  %v221_v49 = vsel %vm218_vm4, %v211_v8, %v213_v45  ;;  %v1618_v45 = vrot.slane %v1509_v60, %v192_v23 }
 0x124   :  { %v239_v50 = vmul.f32 %v1556_v39, %v221_v49  ;;  %v240_v51 = vmul.f32 %v1559_v37, %v220_v48  ;;  %429 = vmatprep.subr.bf16.mxu1 %v357_v46 }
 0x125   :  { %430 = vmatpush1.bf16.msra.mxu1 %v356_v47 }
 0x126   :  { %v149_v56 = vpop.permute.xlu0 %148  ;;  %v217_v57 = vpop.permute.xlu1 %216  ;;  %v351_v1 = vpack.c.bf16 %v240_v51, %v1374_v19  ;;  %v350_v2 = vpack.c.bf16 %v239_v50, %v1365_v15  ;;  %v159_v15 = vsub.s32 2, %v1475_v42 }
 0x127   :  { %v219_v9 = vsel %vm218_vm4, %v215_v30, %v217_v57  ;;  %v222_v11 = vsel %vm218_vm4, %v217_v57, %v211_v8  ;;  %v1595_v30 = vrot.slane %v1495_v55, %v192_v23  ;;  %v93_v23 = vsub.s32 0, %v1475_v42 }
 0x128   :  { %v241_v12 = vmul.f32 %v1572_v53, %v219_v9  ;;  %v242_v18 = vmul.f32 %v1575_v54, %v222_v11  ;;  %390 = vmatprep.subr.bf16.mxu0 %v351_v1  ;;  %v1591_v26 = vrot.slane %v1495_v55, %v159_v15  ;;  %v1603_v33 = vrot.slane %v1509_v60, %v159_v15 }
 0x129   :  { %391 = vmatpush1.bf16.msra.mxu0 %v350_v2  ;;  %v1621_v46 = vrot.slane %v1504_v59, %v159_v15 }
 0x12a   :  { %v178_v17 = vpop.permute.xlu0 %177  ;;  %v147_v21 = vpop.permute.xlu1 %146  ;;  %v353_v22 = vpack.c.bf16 %v242_v18, %v1380_v20  ;;  %v352_v19 = vpack.c.bf16 %v241_v12, %v1367_v16  ;;  %v1600_v20 = vrot.slane %v1487_v52, %v159_v15 }
 0x12b   :  { %v155_v16 = vsel %vm152_vm5, %v145_v44, %v147_v21  ;;  %v154_v49 = vsel %vm152_vm5, %v147_v21, %v149_v56 }
 0x12c   :  { %431 = vmatprep.subr.bf16.mxu1 %v353_v22  ;;  %v174_v40 = vmul.f32 %v1591_v26, %v155_v16  ;;  %v1643_v16 = vrot.slane %v1495_v55, %v93_v23 }
 0x12d   :  { %432 = vmatpush1.bf16.msra.mxu1 %v352_v19 }
 0x12e   :  { %v182_v8 = vpop.permute.xlu0 %181  ;;  %v151_v25 = vpop.permute.xlu1 %150 }
 0x12f   :  { %v153_v47 = vsel %vm152_vm5, %v149_v56, %v151_v25  ;;  %v156_v48 = vsel %vm152_vm5, %v151_v25, %v145_v44  ;;  %v175_v56 = vmul.f32 %v1621_v46, %v154_v49 }
 0x130   :  { %v173_v11 = vmul.f32 %v1600_v20, %v156_v48  ;;  %v176_v12 = vmul.f32 %v1603_v33, %v153_v47 }
 0x132   :  { %v77_v31 = vpop.permute.xlu0 %76  ;;  %v180_v32 = vpop.permute.xlu1 %179 }
 0x133   :  { %v188_v38 = vsel %vm185_vm6, %v178_v17, %v180_v32  ;;  %v187_v41 = vsel %vm185_vm6, %v180_v32, %v182_v8 }
 0x134   :  { %v207_v43 = vmul.f32 %v1595_v30, %v188_v38  ;;  %v208_v57 = vmul.f32 %v1606_v34, %v187_v41 }
 0x136   :  { %v184_v50 = vpop.permute.xlu1 %183  ;;  %v347_v51 = vpack.c.bf16 %v207_v43, %v174_v40  ;;  %v81_v1 = vpop.permute.xlu0 %80  ;;  %v348_v15 = vpack.c.bf16 %v208_v57, %v175_v56  ;;  %v1652_v40 = vrot.slane %v1487_v52, %v93_v23  ;;  %v1655_v43 = vrot.slane %v1509_v60, %v93_v23 }
 0x137   :  { %v186_v2 = vsel %vm185_vm6, %v182_v8, %v184_v50  ;;  %v189_v9 = vsel %vm185_vm6, %v184_v50, %v178_v17  ;;  %v126_v17 = vsub.s32 1, %v1475_v42 }
 0x138   :  { %v206_v44 = vmul.f32 %v1611_v29, %v189_v9  ;;  %v209_v18 = vmul.f32 %v1618_v45, %v186_v2  ;;  %392 = vmatprep.subr.bf16.mxu0 %v347_v51  ;;  %v1673_v2 = vrot.slane %v1504_v59, %v93_v23 }
 0x139   :  { %v1647_v32 = vrot.slane %v1495_v55, %v126_v17  ;;  %v1658_v47 = vrot.slane %v1504_v59, %v126_v17  ;;  %v1663_v55 = vrot.slane %v1487_v52, %v126_v17  ;;  %v1670_v57 = vrot.slane %v1509_v60, %v126_v17  ;;  %v362_v17 = vld [vmem:[%s2126_s3] sm:$0xf] }
 0x13a   :  { %v79_v21 = vpop.permute.xlu1 %78  ;;  %v346_v22 = vpack.c.bf16 %v206_v44, %v173_v11  ;;  %v349_v19 = vpack.c.bf16 %v209_v18, %v176_v12  ;;  %v112_v8 = vpop.permute.xlu0 %111 }
 0x13b   :  { %v89_v38 = vsel %vm86_vm7, %v77_v31, %v79_v21  ;;  %v88_v11 = vsel %vm86_vm7, %v79_v21, %v81_v1 }
 0x13c   :  { %393 = vmatpush1.bf16.msra.mxu0 %v346_v22  ;;  %433 = vmatprep.subr.bf16.mxu1 %v349_v19  ;;  %v108_v49 = vmul.f32 %v1643_v16, %v89_v38 }
 0x13d   :  { %434 = vmatpush1.bf16.msra.mxu1 %v348_v15 }
 0x13e   :  { %v83_v25 = vpop.permute.xlu1 %82  ;;  %v116_v41 = vpop.permute.xlu0 %115 }
 0x13f   :  { %v87_v9 = vsel %vm86_vm7, %v81_v1, %v83_v25  ;;  %v90_v52 = vsel %vm86_vm7, %v83_v25, %v77_v31  ;;  %v109_v1 = vmul.f32 %v1673_v2, %v88_v11 }
 0x140   :  { %v107_v56 = vmul.f32 %v1652_v40, %v90_v52  ;;  %v110_v22 = vmul.f32 %v1655_v43, %v87_v9 }
 0x142   :  { %v114_v42 = vpop.permute.xlu1 %113 }
 0x143   :  { %v122_v48 = vsel %vm119_vm8, %v112_v8, %v114_v42  ;;  %v121_v50 = vsel %vm119_vm8, %v114_v42, %v116_v41 }
 0x144   :  { %v141_v51 = vmul.f32 %v1647_v32, %v122_v48  ;;  %v142_v18 = vmul.f32 %v1658_v47, %v121_v50 }
 0x146   :  { %v118_v12 = vpop.permute.xlu1 %117  ;;  %v343_v44 = vpack.c.bf16 %v141_v51, %v108_v49  ;;  %v344_v23 = vpack.c.bf16 %v142_v18, %v109_v1 }
 0x147   :  { %v120_v60 = vsel %vm119_vm8, %v116_v41, %v118_v12  ;;  %v123_v59 = vsel %vm119_vm8, %v118_v12, %v112_v8 }
 0x148   :  { %v140_v19 = vmul.f32 %v1663_v55, %v123_v59  ;;  %v143_v31 = vmul.f32 %v1670_v57, %v120_v60  ;;  %394 = vmatprep.subr.bf16.mxu0 %v343_v44 }
 0x14a   :  { %v342_v21 = vpack.c.bf16 %v140_v19, %v107_v56  ;;  %v345_v15 = vpack.c.bf16 %v143_v31, %v110_v22 }
 0x14b   :  { %v467_v8 = vpop.permute.xlu0 %466 }
 0x14c   :  { %395 = vmatpush1.bf16.msra.mxu0 %v342_v21  ;;  %435 = vmatprep.subr.bf16.mxu1 %v345_v15  ;;  %v732_v21 = vld [vmem:[%s2125_s2 + $0x20] sm:$0xff]  ;;  %v733_v15 = vld [vmem:[%s2125_s2 + $0x28] sm:$0xff] }
 0x14d   :  { %436 = vmatpush1.bf16.msra.mxu1 %v344_v23  ;;  %v905_v23 = vld [vmem:[%s2125_s2 + $0x30] sm:$0xff] }
 0x14f   :  { %1204 = vmatmul.mubr.msk.bf16.vlgmr.msra.gmra.mxu0 %vm363_vm9, %v362_v17 }
 0x150   :  { %1206 = vmatmul.mubr.msk.bf16.vlgmr.msra.gmra.mxu1 %vm363_vm9, %v362_v17  ;;  %682 = vmatprep.mubr.bf16.mxu0 %v1289_v0  ;;  %v906_v17 = vld [vmem:[%s2125_s2 + $0x38] sm:$0xff] }
 0x151   :  { %723 = vmatprep.mubr.bf16.mxu1 %v1289_v0 }
 0x153   :  { %v476_v38 = vpop.permute.xlu1 %475 }
 0x20f   :  { %v1698_v25 = vpop.f32.mrf.mxu0 }
 0x210   :  { %v469_v42 = vmul.f32 %v467_v8, %v1698_v25  ;;  %v1701_v41 = vpop.f32.mrf.mxu1 }
 0x211   :  { %v471_v48 = vmul.f32 %v467_v8, %v1701_v41  ;;  %v1704_v49 = vpop.f32.mrf.mxu0 }
 0x212   :  { %v470_v50 = vmul.f32 %v467_v8, %v1704_v49  ;;  %v478_v51 = vadd.f32 %v476_v38, %v469_v42  ;;  %v1707_v9 = vpop.f32.mrf.mxu1 }
 0x213   :  { %v472_v52 = vmul.f32 %v467_v8, %v1707_v9  ;;  %v418_v11 = vpop.f32.mrf.mxu0  ;;  %v480_v44 = vadd.f32 %v476_v38, %v471_v48 }
 0x214   :  { %v479_v12 = vadd.f32 %v476_v38, %v470_v50  ;;  %v1710_v18 = vmax.f32 %v478_v51, 0.0  ;;  %v459_v60 = vpop.f32.mrf.mxu1 }
 0x215   :  { %v419_v59 = vpop.f32.mrf.mxu0  ;;  %v481_v22 = vadd.f32 %v476_v38, %v472_v52  ;;  %v1716_v31 = vmax.f32 %v480_v44, 0.0 }
 0x216   :  { %v1712_v56 = vmax.f32 %v479_v12, 0.0  ;;  %v460_v19 = vpop.f32.mrf.mxu1  ;;  %598 = vrot.lane.b32.xlu0 %v1710_v18, %s1290_s0 }
 0x217   :  { %v1720_v1 = vmax.f32 %v481_v22, 0.0 }
 0x218   :  { %600 = vrot.lane.b32.xlu1 %v1712_v56, %s1290_s0 }
 0x21a   :  { %602 = vrot.lane.b32.xlu0 %v1716_v31, %s1290_s0 }
 0x21c   :  { %604 = vrot.lane.b32.xlu1 %v1720_v1, %s1290_s0 }
 0x21e   :  { %566 = vrot.lane.b32.xlu0 %v1710_v18, %s1291_s10 }
 0x220   :  { %568 = vrot.lane.b32.xlu1 %v1712_v56, %s1291_s10 }
 0x222   :  { %570 = vrot.lane.b32.xlu0 %v1716_v31, %s1291_s10 }
 0x224   :  { %572 = vrot.lane.b32.xlu1 %v1720_v1, %s1291_s10 }
 0x226   :  { %582 = vrot.lane.b32.xlu0 %v1710_v18, %s1292_s11 }
 0x228   :  { %584 = vrot.lane.b32.xlu1 %v1712_v56, %s1292_s11 }
 0x22a   :  { %586 = vrot.lane.b32.xlu0 %v1716_v31, %s1292_s11 }
 0x22c   :  { %588 = vrot.lane.b32.xlu1 %v1720_v1, %s1292_s11 }
 0x22e   :  { %550 = vrot.lane.b32.xlu0 %v1710_v18, %s1293_s12 }
 0x230   :  { %552 = vrot.lane.b32.xlu1 %v1712_v56, %s1293_s12 }
 0x232   :  { %554 = vrot.lane.b32.xlu0 %v1716_v31, %s1293_s12 }
 0x234   :  { %556 = vrot.lane.b32.xlu1 %v1720_v1, %s1293_s12 }
 0x236   :  { %518 = vrot.lane.b32.xlu0 %v1710_v18, %s1294_s13 }
 0x238   :  { %520 = vrot.lane.b32.xlu1 %v1712_v56, %s1294_s13 }
 0x23a   :  { %522 = vrot.lane.b32.xlu0 %v1716_v31, %s1294_s13 }
 0x23c   :  { %524 = vrot.lane.b32.xlu1 %v1720_v1, %s1294_s13 }
 0x23e   :  { %534 = vrot.lane.b32.xlu0 %v1710_v18, %s1295_s14 }
 0x240   :  { %536 = vrot.lane.b32.xlu1 %v1712_v56, %s1295_s14 }
 0x242   :  { %538 = vrot.lane.b32.xlu0 %v1716_v31, %s1295_s14 }
 0x244   :  { %540 = vrot.lane.b32.xlu1 %v1720_v1, %s1295_s14 }
 0x246   :  { %486 = vrot.lane.b32.xlu0 %v1710_v18, %s1296_s15 }
 0x248   :  { %488 = vrot.lane.b32.xlu1 %v1712_v56, %s1296_s15 }
 0x24a   :  { %490 = vrot.lane.b32.xlu0 %v1716_v31, %s1296_s15 }
 0x24c   :  { %492 = vrot.lane.b32.xlu1 %v1720_v1, %s1296_s15 }
 0x24e   :  { %502 = vrot.lane.b32.xlu0 %v1710_v18, %s1297_s16 }
 0x250   :  { %504 = vrot.lane.b32.xlu1 %v1712_v56, %s1297_s16 }
 0x252   :  { %506 = vrot.lane.b32.xlu0 %v1716_v31, %s1297_s16 }
 0x254   :  { %508 = vrot.lane.b32.xlu1 %v1720_v1, %s1297_s16 }
 0x256   :  { %736 = vperm.xlu0 %1236, %v732_v21  }
 0x258   :  { %745 = vperm.xlu1 %1237, %v733_v15  }
 0x25a   :  { %909 = vperm.xlu0 %1236, %v905_v23  }
 0x25c   :  { %918 = vperm.xlu1 %1237, %v906_v17  }
 0x288   :  { %v599_v8 = vpop.permute.xlu0 %598 }
 0x28a   :  { %v601_v38 = vpop.permute.xlu1 %600 }
 0x28b   :  { %v608_v42 = vsel %vm317_vm0, %v599_v8, %v601_v38 }
 0x28c   :  { %v610_v48 = vmul.f32 %v1455_v28, %v608_v42  ;;  %v603_v50 = vpop.permute.xlu0 %602 }
 0x28d   :  { %v607_v51 = vsel %vm317_vm0, %v601_v38, %v603_v50 }
 0x28e   :  { %v630_v52 = vpack.c.bf16 %v610_v48, %v610_v48  ;;  %v611_v11 = vmul.f32 %v1450_v27, %v607_v51  ;;  %v605_v12 = vpop.permute.xlu1 %604 }
 0x28f   :  { %v606_v44 = vsel %vm317_vm0, %v603_v50, %v605_v12  ;;  %v609_v60 = vsel %vm317_vm0, %v605_v12, %v599_v8 }
 0x290   :  { %v631_v59 = vpack.c.bf16 %v611_v11, %v611_v11  ;;  %v612_v22 = vmul.f32 %v1471_v36, %v606_v44  ;;  %v613_v19 = vmul.f32 %v1466_v35, %v609_v60  ;;  %v567_v28 = vpop.permute.xlu0 %566  ;;  %v639_v27 = vsel %vm367_vm1, %v630_v52, 0 }
 0x292   :  { %v632_v21 = vpack.c.bf16 %v612_v22, %v612_v22  ;;  %v633_v15 = vpack.c.bf16 %v613_v19, %v613_v19  ;;  %v569_v23 = vpop.permute.xlu1 %568  ;;  %1207 = vmatprep.subr.msk.bf16.mxu0 %vm367_vm1, %v631_v59 }
 0x293   :  { %657 = vmatpush1.bf16.msra.mxu0 %v639_v27  ;;  %v576_v50 = vsel %vm251_vm2, %v567_v28, %v569_v23 }
 0x294   :  { %1209 = vmatprep.subr.msk.bf16.mxu1 %vm367_vm1, %v633_v15  ;;  %v571_v17 = vpop.permute.xlu0 %570  ;;  %v645_v38 = vsel %vm367_vm1, %v632_v21, 0  ;;  %v578_v19 = vmul.f32 %v576_v50, %v1499_v58 }
 0x295   :  { %698 = vmatpush1.bf16.msra.mxu1 %v645_v38  ;;  %v575_v35 = vsel %vm251_vm2, %v569_v23, %v571_v17 }
 0x296   :  { %v573_v8 = vpop.permute.xlu1 %572  ;;  %v579_v60 = vmul.f32 %v575_v35, %v1512_v61 }
 0x297   :  { %v574_v51 = vsel %vm251_vm2, %v571_v17, %v573_v8  ;;  %v577_v11 = vsel %vm251_vm2, %v573_v8, %v567_v28 }
 0x298   :  { %v583_v42 = vpop.permute.xlu0 %582  ;;  %v580_v21 = vmul.f32 %v574_v51, %v1526_v3  ;;  %v581_v23 = vmul.f32 %v577_v11, %v1529_v7 }
 0x29a   :  { %v585_v36 = vpop.permute.xlu1 %584 }
 0x29b   :  { %v592_v48 = vsel %vm284_vm3, %v583_v42, %v585_v36 }
 0x29c   :  { %v587_v52 = vpop.permute.xlu0 %586  ;;  %v594_v12 = vmul.f32 %v592_v48, %v1516_v62 }
 0x29d   :  { %v591_v44 = vsel %vm284_vm3, %v585_v36, %v587_v52 }
 0x29e   :  { %v595_v59 = vmul.f32 %v591_v44, %v1519_v63  ;;  %v589_v22 = vpop.permute.xlu1 %588  ;;  %v626_v36 = vpack.c.bf16 %v594_v12, %v578_v19 }
 0x29f   :  { %v590_v15 = vsel %vm284_vm3, %v587_v52, %v589_v22  ;;  %v593_v28 = vsel %vm284_vm3, %v589_v22, %v583_v42 }
 0x2a0   :  { %v596_v27 = vmul.f32 %v590_v15, %v1532_v10  ;;  %v597_v17 = vmul.f32 %v593_v28, %v1539_v14  ;;  %v551_v38 = vpop.permute.xlu0 %550  ;;  %v627_v8 = vpack.c.bf16 %v595_v59, %v579_v60 }
 0x2a2   :  { %v628_v35 = vpack.c.bf16 %v596_v27, %v580_v21  ;;  %v553_v48 = vpop.permute.xlu1 %552  ;;  %658 = vmatprep.subr.bf16.mxu0 %v627_v8  ;;  %v629_v50 = vpack.c.bf16 %v597_v17, %v581_v23 }
 0x2a3   :  { %v560_v51 = vsel %vm218_vm4, %v551_v38, %v553_v48  ;;  %659 = vmatpush1.bf16.msra.mxu0 %v626_v36 }
 0x2a4   :  { %699 = vmatprep.subr.bf16.mxu1 %v629_v50  ;;  %v555_v52 = vpop.permute.xlu0 %554  ;;  %v562_v42 = vmul.f32 %v560_v51, %v1556_v39 }
 0x2a5   :  { %v559_v11 = vsel %vm218_vm4, %v553_v48, %v555_v52  ;;  %700 = vmatpush1.bf16.msra.mxu1 %v628_v35 }
 0x2a6   :  { %v563_v44 = vmul.f32 %v559_v11, %v1559_v37  ;;  %v557_v60 = vpop.permute.xlu1 %556  ;;  %v622_v28 = vpack.c.bf16 %v562_v42, %v1710_v18 }
 0x2a7   :  { %v558_v12 = vsel %vm218_vm4, %v555_v52, %v557_v60  ;;  %v561_v59 = vsel %vm218_vm4, %v557_v60, %v551_v38 }
 0x2a8   :  { %v564_v22 = vmul.f32 %v558_v12, %v1572_v53  ;;  %v565_v19 = vmul.f32 %v561_v59, %v1575_v54  ;;  %v519_v21 = vpop.permute.xlu0 %518  ;;  %v623_v15 = vpack.c.bf16 %v563_v44, %v1712_v56 }
 0x2aa   :  { %v624_v23 = vpack.c.bf16 %v564_v22, %v1716_v31  ;;  %v521_v27 = vpop.permute.xlu1 %520  ;;  %660 = vmatprep.subr.bf16.mxu0 %v623_v15  ;;  %v625_v17 = vpack.c.bf16 %v565_v19, %v1720_v1 }
 0x2ab   :  { %661 = vmatpush1.bf16.msra.mxu0 %v622_v28  ;;  %v528_v35 = vsel %vm152_vm5, %v519_v21, %v521_v27 }
 0x2ac   :  { %701 = vmatprep.subr.bf16.mxu1 %v625_v17  ;;  %v523_v8 = vpop.permute.xlu0 %522  ;;  %v531_v18 = vmul.f32 %v528_v35, %v1591_v26 }
 0x2ad   :  { %702 = vmatpush1.bf16.msra.mxu1 %v624_v23  ;;  %v527_v42 = vsel %vm152_vm5, %v521_v27, %v523_v8 }
 0x2ae   :  { %v525_v38 = vpop.permute.xlu1 %524  ;;  %v532_v23 = vmul.f32 %v527_v42, %v1621_v46 }
 0x2af   :  { %v526_v1 = vsel %vm152_vm5, %v523_v8, %v525_v38  ;;  %v529_v51 = vsel %vm152_vm5, %v525_v38, %v519_v21 }
 0x2b0   :  { %v535_v36 = vpop.permute.xlu0 %534  ;;  %v530_v22 = vmul.f32 %v529_v51, %v1600_v20  ;;  %v533_v19 = vmul.f32 %v526_v1, %v1603_v33 }
 0x2b2   :  { %v537_v48 = vpop.permute.xlu1 %536 }
 0x2b3   :  { %v544_v56 = vsel %vm185_vm6, %v535_v36, %v537_v48 }
 0x2b4   :  { %v547_v31 = vmul.f32 %v544_v56, %v1595_v30  ;;  %v539_v50 = vpop.permute.xlu0 %538 }
 0x2b5   :  { %v543_v52 = vsel %vm185_vm6, %v537_v48, %v539_v50 }
 0x2b6   :  { %v541_v11 = vpop.permute.xlu1 %540  ;;  %v619_v44 = vpack.c.bf16 %v547_v31, %v531_v18  ;;  %v548_v60 = vmul.f32 %v543_v52, %v1606_v34 }
 0x2b7   :  { %v542_v12 = vsel %vm185_vm6, %v539_v50, %v541_v11  ;;  %v545_v59 = vsel %vm185_vm6, %v541_v11, %v535_v36 }
 0x2b8   :  { %v546_v21 = vmul.f32 %v545_v59, %v1611_v29  ;;  %v549_v15 = vmul.f32 %v542_v12, %v1618_v45  ;;  %662 = vmatprep.subr.bf16.mxu0 %v619_v44  ;;  %v487_v28 = vpop.permute.xlu0 %486  ;;  %v620_v38 = vpack.c.bf16 %v548_v60, %v532_v23 }
 0x2ba   :  { %v618_v27 = vpack.c.bf16 %v546_v21, %v530_v22  ;;  %v489_v17 = vpop.permute.xlu1 %488  ;;  %v621_v8 = vpack.c.bf16 %v549_v15, %v533_v19 }
 0x2bb   :  { %v496_v56 = vsel %vm86_vm7, %v487_v28, %v489_v17 }
 0x2bc   :  { %663 = vmatpush1.bf16.msra.mxu0 %v618_v27  ;;  %703 = vmatprep.subr.bf16.mxu1 %v621_v8  ;;  %v491_v35 = vpop.permute.xlu0 %490  ;;  %v499_v50 = vmul.f32 %v496_v56, %v1643_v16 }
 0x2bd   :  { %704 = vmatpush1.bf16.msra.mxu1 %v620_v38  ;;  %v495_v44 = vsel %vm86_vm7, %v489_v17, %v491_v35 }
 0x2be   :  { %v493_v36 = vpop.permute.xlu1 %492  ;;  %v500_v27 = vmul.f32 %v495_v44, %v1673_v2 }
 0x2bf   :  { %v494_v52 = vsel %vm86_vm7, %v491_v35, %v493_v36  ;;  %v497_v42 = vsel %vm86_vm7, %v493_v36, %v487_v28  ;;  %v634_v35 = vld [vmem:[%s2127_s4] sm:$0xf] }
 0x2c0   :  { %v503_v48 = vpop.permute.xlu0 %502  ;;  %v498_v21 = vmul.f32 %v497_v42, %v1652_v40  ;;  %v501_v15 = vmul.f32 %v494_v52, %v1655_v43 }
 0x2c2   :  { %v505_v18 = vpop.permute.xlu1 %504 }
 0x2c3   :  { %v512_v31 = vsel %vm119_vm8, %v503_v48, %v505_v18 }
 0x2c4   :  { %v515_v1 = vmul.f32 %v512_v31, %v1647_v32  ;;  %v507_v51 = vpop.permute.xlu0 %506 }
 0x2c5   :  { %v511_v11 = vsel %vm119_vm8, %v505_v18, %v507_v51 }
 0x2c6   :  { %v509_v60 = vpop.permute.xlu1 %508  ;;  %v615_v12 = vpack.c.bf16 %v515_v1, %v499_v50  ;;  %v516_v59 = vmul.f32 %v511_v11, %v1658_v47 }
 0x2c7   :  { %v510_v22 = vsel %vm119_vm8, %v507_v51, %v509_v60  ;;  %v513_v19 = vsel %vm119_vm8, %v509_v60, %v503_v48 }
 0x2c8   :  { %v514_v28 = vmul.f32 %v513_v19, %v1663_v55  ;;  %v517_v23 = vmul.f32 %v510_v22, %v1670_v57  ;;  %664 = vmatprep.subr.bf16.mxu0 %v615_v12  ;;  %v616_v38 = vpack.c.bf16 %v516_v59, %v500_v27 }
 0x2ca   :  { %v614_v17 = vpack.c.bf16 %v514_v28, %v498_v21  ;;  %v617_v8 = vpack.c.bf16 %v517_v23, %v501_v15 }
 0x2cc   :  { %665 = vmatpush1.bf16.msra.mxu0 %v614_v17  ;;  %705 = vmatprep.subr.bf16.mxu1 %v617_v8 }
 0x2cd   :  { %706 = vmatpush1.bf16.msra.mxu1 %v616_v38 }
 0x2cf   :  { %1208 = vmatmul.mubr.msk.bf16.vlgmr.msra.gmra.mxu0 %vm363_vm9, %v634_v35 }
 0x2d0   :  { %1210 = vmatmul.mubr.msk.bf16.vlgmr.msra.gmra.mxu1 %vm363_vm9, %v634_v35  ;;  %995 = vmatprep.mubr.bf16.mxu0 %v1289_v0 }
 0x2d1   :  { %v737_v36 = vpop.permute.xlu0 %736  ;;  %1046 = vmatprep.mubr.bf16.mxu1 %v1289_v0 }
 0x2d3   :  { %v746_v48 = vpop.permute.xlu1 %745 }
 0x2d5   :  { %v910_v56 = vpop.permute.xlu0 %909 }
 0x2d6   :  { %v912_v18 = vmul.f32 %v910_v56, %v1354_v4  ;;  %v913_v31 = vmul.f32 %v910_v56, %v1358_v6  ;;  %v914_v50 = vmul.f32 %v910_v56, %v1356_v5  ;;  %v915_v1 = vmul.f32 %v910_v56, %v1363_v13  ;;  %v1238_v6 = vld [vmem:[%s2129_s6] sm:$0xff]  }
 0x2d7   :  { %v919_v51 = vpop.permute.xlu1 %918 }
 0x2d8   :  { %v921_v52 = vadd.f32 %v919_v51, %v912_v18  ;;  %v922_v42 = vadd.f32 %v919_v51, %v913_v31  ;;  %v923_v11 = vadd.f32 %v919_v51, %v914_v50  ;;  %v924_v44 = vadd.f32 %v919_v51, %v915_v1 }
 0x2da   :  { %v926_v60 = vmax.f32 %v922_v42, 0.0  ;;  %v928_v12 = vmax.f32 %v924_v44, 0.0  ;;  %v925_v59 = vmax.f32 %v921_v52, 0.0  ;;  %v927_v22 = vmax.f32 %v923_v11, 0.0 }
 0x2dc   :  { %v930_v19 = vpack.c.bf16 %v926_v60, %v926_v60  ;;  %v932_v21 = vpack.c.bf16 %v928_v12, %v928_v12  ;;  %v929_v15 = vpack.c.bf16 %v925_v59, %v925_v59  ;;  %v931_v28 = vpack.c.bf16 %v927_v22, %v927_v22 }
 0x2de   :  { %1213 = vmatprep.subr.msk.bf16.mxu0 %vm367_vm1, %v930_v19  ;;  %1216 = vmatprep.subr.msk.bf16.mxu1 %vm367_vm1, %v932_v21  ;;  %v952_v4 = vsel %vm367_vm1, %v929_v15, 0  ;;  %v958_v5 = vsel %vm367_vm1, %v931_v28, 0 }
 0x2df   :  { %978 = vmatpush1.bf16.msra.mxu0 %v952_v4  ;;  %1029 = vmatpush1.bf16.msra.mxu1 %v958_v5 }
 0x2e2   :  { %1214 = vmatmul.mubr.msk.bf16.vlgmr.msra.gmra.mxu0 %vm944_vm10, %v1238_v6  ;;  %1217 = vmatmul.mubr.msk.bf16.vlgmr.msra.gmra.mxu1 %vm944_vm10, %v1238_v6 }
 0x2e3   :  { %1005 = vmatprep.mubr.bf16.mxu0 %v1289_v0  ;;  %1056 = vmatprep.mubr.bf16.mxu1 %v1289_v0 }
 0x38f   :  { %v684_v13 = vpop.f32.mrf.mxu0 }
 0x390   :  { %v739_v23 = vmul.f32 %v737_v36, %v684_v13  ;;  %v725_v27 = vpop.f32.mrf.mxu1 }
 0x391   :  { %v741_v17 = vmul.f32 %v737_v36, %v725_v27  ;;  %v686_v8 = vpop.f32.mrf.mxu0 }
 0x392   :  { %v748_v38 = vadd.f32 %v746_v48, %v739_v23  ;;  %v740_v35 = vmul.f32 %v737_v36, %v686_v8  ;;  %v727_v56 = vpop.f32.mrf.mxu1 }
 0x393   :  { %v742_v18 = vmul.f32 %v737_v36, %v727_v56  ;;  %v688_v31 = vpop.f32.mrf.mxu0  ;;  %v750_v1 = vadd.f32 %v746_v48, %v741_v17 }
 0x394   :  { %v1920_v50 = vmax.f32 %v748_v38, 0.0  ;;  %v749_v51 = vadd.f32 %v746_v48, %v740_v35  ;;  %v729_v52 = vpop.f32.mrf.mxu1 }
 0x395   :  { %v689_v42 = vpop.f32.mrf.mxu0  ;;  %v751_v44 = vadd.f32 %v746_v48, %v742_v18  ;;  %v1926_v12 = vmax.f32 %v750_v1, 0.0  ;;  %v1241_v1 = vld [vmem:[%s2124_s1 + $0x28] ss:$0 sm:$0xff] }
 0x396   :  { %v1922_v11 = vmax.f32 %v749_v51, 0.0  ;;  %v730_v60 = vpop.f32.mrf.mxu1  ;;  %868 = vrot.lane.b32.xlu0 %v1920_v50, %s1290_s0 }
 0x397   :  { %v1930_v36 = vmax.f32 %v751_v44, 0.0 }
 0x398   :  { %870 = vrot.lane.b32.xlu1 %v1922_v11, %s1290_s0 }
 0x39a   :  { %872 = vrot.lane.b32.xlu0 %v1926_v12, %s1290_s0 }
 0x39c   :  { %874 = vrot.lane.b32.xlu1 %v1930_v36, %s1290_s0 }
 0x39e   :  { %836 = vrot.lane.b32.xlu0 %v1920_v50, %s1291_s10 }
 0x3a0   :  { %838 = vrot.lane.b32.xlu1 %v1922_v11, %s1291_s10 }
 0x3a2   :  { %840 = vrot.lane.b32.xlu0 %v1926_v12, %s1291_s10  ;;  %v997_v48 = vpop.f32.mrf.mxu0  ;;  %v1048_v59 = vpop.f32.mrf.mxu1 }
 0x3a3   :  { %v1065_v22 = vadd.f32 %v997_v48, %v1698_v25  ;;  %v1067_v19 = vadd.f32 %v1048_v59, %v1701_v41  ;;  %v1242_v48 = vld [vmem:[%s2124_s1 + $0x30] ss:$0 sm:$0xff] }
 0x3a4   :  { %842 = vrot.lane.b32.xlu1 %v1930_v36, %s1291_s10  ;;  %v999_v21 = vpop.f32.mrf.mxu0  ;;  %v1050_v15 = vpop.f32.mrf.mxu1 }
 0x3a5   :  { %1069 = vst [vmem:[#allocation5] sm:$0xff] %v1065_v22  ;;  %1071 = vst [vmem:[#allocation5 + $0x10] sm:$0xff] %v1067_v19  ;;  %v1066_v28 = vadd.f32 %v999_v21, %v1704_v49  ;;  %v1068_v4 = vadd.f32 %v1050_v15, %v1707_v9  ;;  %v1239_v9 = vld [vmem:[%s2129_s6 + $0x8] ss:$0 sps:$4 sm:$0xff]   ;;  %v1243_v22 = vld [vmem:[%s2124_s1 + $0x38] ss:$0 sm:$0xff] }
 0x3a6   :  { %852 = vrot.lane.b32.xlu0 %v1920_v50, %s1292_s11  ;;  %v1001_v5 = vpop.f32.mrf.mxu0  ;;  %v1052_v6 = vpop.f32.mrf.mxu1  ;;  %1215 = vmatmul.mubr.msk.bf16.gmra.mxu0 %vm944_vm10, %v1239_v9 }
 0x3a7   :  { %1070 = vst [vmem:[#allocation5 + $0x8] sm:$0xff] %v1066_v28  ;;  %1072 = vst [vmem:[#allocation5 + $0x18] sm:$0xff] %v1068_v4  ;;  %v1073_v25 = vadd.f32 %v1001_v5, %v684_v13  ;;  %v1075_v41 = vadd.f32 %v1052_v6, %v725_v27  ;;  %1218 = vmatmul.mubr.msk.bf16.gmra.mxu1 %vm944_vm10, %v1239_v9  ;;  %1128 = vmatprep.mubr.bf16.mxu0 %v1289_v0 }
 0x3a8   :  { %854 = vrot.lane.b32.xlu1 %v1922_v11, %s1292_s11  ;;  %v1003_v23 = vpop.f32.mrf.mxu0  ;;  %v1054_v17 = vpop.f32.mrf.mxu1  ;;  %1169 = vmatprep.mubr.bf16.mxu1 %v1289_v0 }
 0x3a9   :  { %1077 = vst [vmem:[#allocation5 + $0x20] sm:$0xff] %v1073_v25  ;;  %1079 = vst [vmem:[#allocation5 + $0x30] sm:$0xff] %v1075_v41  ;;  %v1074_v38 = vadd.f32 %v1003_v23, %v686_v8  ;;  %v1076_v49 = vadd.f32 %v1054_v17, %v727_v56  ;;  %v1240_v8 = vld [vmem:[%s2124_s1 + $0x20] ss:$0 sm:$0xff] }
 0x3aa   :  { %856 = vrot.lane.b32.xlu0 %v1926_v12, %s1292_s11 }
 0x3ab   :  { %1078 = vst [vmem:[#allocation5 + $0x28] sm:$0xff] %v1074_v38  ;;  %1080 = vst [vmem:[#allocation5 + $0x38] sm:$0xff] %v1076_v49 }
 0x3ac   :  { %858 = vrot.lane.b32.xlu1 %v1930_v36, %s1292_s11 }
 0x3ae   :  { %820 = vrot.lane.b32.xlu0 %v1920_v50, %s1293_s12 }
 0x3b0   :  { %822 = vrot.lane.b32.xlu1 %v1922_v11, %s1293_s12 }
 0x3b2   :  { %824 = vrot.lane.b32.xlu0 %v1926_v12, %s1293_s12 }
 0x3b4   :  { %826 = vrot.lane.b32.xlu1 %v1930_v36, %s1293_s12 }
 0x3b6   :  { %788 = vrot.lane.b32.xlu0 %v1920_v50, %s1294_s13 }
 0x3b8   :  { %790 = vrot.lane.b32.xlu1 %v1922_v11, %s1294_s13 }
 0x3ba   :  { %792 = vrot.lane.b32.xlu0 %v1926_v12, %s1294_s13 }
 0x3bc   :  { %794 = vrot.lane.b32.xlu1 %v1930_v36, %s1294_s13 }
 0x3be   :  { %804 = vrot.lane.b32.xlu0 %v1920_v50, %s1295_s14 }
 0x3c0   :  { %806 = vrot.lane.b32.xlu1 %v1922_v11, %s1295_s14 }
 0x3c2   :  { %808 = vrot.lane.b32.xlu0 %v1926_v12, %s1295_s14 }
 0x3c4   :  { %810 = vrot.lane.b32.xlu1 %v1930_v36, %s1295_s14 }
 0x3c6   :  { %756 = vrot.lane.b32.xlu0 %v1920_v50, %s1296_s15 }
 0x3c8   :  { %758 = vrot.lane.b32.xlu1 %v1922_v11, %s1296_s15 }
 0x3ca   :  { %760 = vrot.lane.b32.xlu0 %v1926_v12, %s1296_s15 }
 0x3cc   :  { %762 = vrot.lane.b32.xlu1 %v1930_v36, %s1296_s15 }
 0x3ce   :  { %772 = vrot.lane.b32.xlu0 %v1920_v50, %s1297_s16 }
 0x3d0   :  { %774 = vrot.lane.b32.xlu1 %v1922_v11, %s1297_s16 }
 0x3d2   :  { %776 = vrot.lane.b32.xlu0 %v1926_v12, %s1297_s16 }
 0x3d4   :  { %778 = vrot.lane.b32.xlu1 %v1930_v36, %s1297_s16 }
 0x408   :  { %v869_v0 = vpop.permute.xlu0 %868 }
 0x40a   :  { %v871_v13 = vpop.permute.xlu1 %870 }
 0x40b   :  { %v878_v27 = vsel %vm317_vm0, %v869_v0, %v871_v13 }
 0x40c   :  { %v880_v35 = vmul.f32 %v1240_v8, %v878_v27  ;;  %v873_v56 = vpop.permute.xlu0 %872 }
 0x40d   :  { %v877_v18 = vsel %vm317_vm0, %v871_v13, %v873_v56 }
 0x40e   :  { %v900_v31 = vpack.c.bf16 %v880_v35, %v880_v35  ;;  %v881_v51 = vmul.f32 %v1241_v1, %v877_v18  ;;  %v875_v52 = vpop.permute.xlu1 %874 }
 0x40f   :  { %v876_v42 = vsel %vm317_vm0, %v873_v56, %v875_v52  ;;  %v879_v44 = vsel %vm317_vm0, %v875_v52, %v869_v0 }
 0x410   :  { %v901_v60 = vpack.c.bf16 %v881_v51, %v881_v51  ;;  %v882_v59 = vmul.f32 %v1242_v48, %v876_v42  ;;  %v883_v19 = vmul.f32 %v1243_v22, %v879_v44  ;;  %v837_v21 = vpop.permute.xlu0 %836  ;;  %v1085_v5 = vsel %vm367_vm1, %v900_v31, 0 }
 0x412   :  { %v902_v15 = vpack.c.bf16 %v882_v59, %v882_v59  ;;  %v903_v28 = vpack.c.bf16 %v883_v19, %v883_v19  ;;  %v839_v4 = vpop.permute.xlu1 %838  ;;  %1219 = vmatprep.subr.msk.bf16.mxu0 %vm367_vm1, %v901_v60 }
 0x413   :  { %1103 = vmatpush1.bf16.msra.mxu0 %v1085_v5  ;;  %v846_v9 = vsel %vm251_vm2, %v837_v21, %v839_v4 }
 0x414   :  { %1221 = vmatprep.subr.msk.bf16.mxu1 %vm367_vm1, %v903_v28  ;;  %v841_v6 = vpop.permute.xlu0 %840  ;;  %v1091_v25 = vsel %vm367_vm1, %v902_v15, 0  ;;  %v848_v1 = vmul.f32 %v846_v9, %v1499_v58 }
 0x415   :  { %1144 = vmatpush1.bf16.msra.mxu1 %v1091_v25  ;;  %v845_v38 = vsel %vm251_vm2, %v839_v4, %v841_v6 }
 0x416   :  { %v843_v41 = vpop.permute.xlu1 %842  ;;  %v849_v56 = vmul.f32 %v845_v38, %v1512_v61 }
 0x417   :  { %v844_v0 = vsel %vm251_vm2, %v841_v6, %v843_v41  ;;  %v847_v27 = vsel %vm251_vm2, %v843_v41, %v837_v21 }
 0x418   :  { %v853_v23 = vpop.permute.xlu0 %852  ;;  %v850_v51 = vmul.f32 %v844_v0, %v1526_v3 }
 0x41a   :  { %v855_v17 = vpop.permute.xlu1 %854 }
 0x41b   :  { %v862_v49 = vsel %vm284_vm3, %v853_v23, %v855_v17 }
 0x41c   :  { %v857_v13 = vpop.permute.xlu0 %856  ;;  %v864_v8 = vmul.f32 %v862_v49, %v1516_v62  ;;  %v851_v62 = vmul.f32 %v847_v27, %v1529_v7 }
 0x41d   :  { %v861_v35 = vsel %vm284_vm3, %v855_v17, %v857_v13 }
 0x41e   :  { %v865_v18 = vmul.f32 %v861_v35, %v1519_v63  ;;  %v859_v31 = vpop.permute.xlu1 %858  ;;  %v896_v63 = vpack.c.bf16 %v864_v8, %v848_v1 }
 0x41f   :  { %v860_v52 = vsel %vm284_vm3, %v857_v13, %v859_v31  ;;  %v863_v42 = vsel %vm284_vm3, %v859_v31, %v853_v23 }
 0x420   :  { %v866_v44 = vmul.f32 %v860_v52, %v1532_v10  ;;  %v867_v60 = vmul.f32 %v863_v42, %v1539_v14  ;;  %v821_v61 = vpop.permute.xlu0 %820  ;;  %v897_v48 = vpack.c.bf16 %v865_v18, %v849_v56 }
 0x422   :  { %v898_v59 = vpack.c.bf16 %v866_v44, %v850_v51  ;;  %v823_v22 = vpop.permute.xlu1 %822  ;;  %1104 = vmatprep.subr.bf16.mxu0 %v897_v48  ;;  %v899_v58 = vpack.c.bf16 %v867_v60, %v851_v62 }
 0x423   :  { %v830_v3 = vsel %vm218_vm4, %v821_v61, %v823_v22  ;;  %1105 = vmatpush1.bf16.msra.mxu0 %v896_v63 }
 0x424   :  { %1145 = vmatprep.subr.bf16.mxu1 %v899_v58  ;;  %v825_v19 = vpop.permute.xlu0 %824  ;;  %v832_v21 = vmul.f32 %v830_v3, %v1556_v39 }
 0x425   :  { %v829_v7 = vsel %vm218_vm4, %v823_v22, %v825_v19  ;;  %1146 = vmatpush1.bf16.msra.mxu1 %v898_v59 }
 0x426   :  { %v833_v10 = vmul.f32 %v829_v7, %v1559_v37  ;;  %v827_v14 = vpop.permute.xlu1 %826  ;;  %v892_v25 = vpack.c.bf16 %v832_v21, %v1920_v50 }
 0x427   :  { %v828_v15 = vsel %vm218_vm4, %v825_v19, %v827_v14  ;;  %v831_v28 = vsel %vm218_vm4, %v827_v14, %v821_v61 }
 0x428   :  { %v834_v4 = vmul.f32 %v828_v15, %v1572_v53  ;;  %v835_v5 = vmul.f32 %v831_v28, %v1575_v54  ;;  %v789_v6 = vpop.permute.xlu0 %788  ;;  %v893_v39 = vpack.c.bf16 %v833_v10, %v1922_v11 }
 0x42a   :  { %v894_v41 = vpack.c.bf16 %v834_v4, %v1926_v12  ;;  %v791_v23 = vpop.permute.xlu1 %790  ;;  %1106 = vmatprep.subr.bf16.mxu0 %v893_v39  ;;  %v895_v37 = vpack.c.bf16 %v835_v5, %v1930_v36 }
 0x42b   :  { %1107 = vmatpush1.bf16.msra.mxu0 %v892_v25  ;;  %v798_v53 = vsel %vm152_vm5, %v789_v6, %v791_v23 }
 0x42c   :  { %1147 = vmatprep.subr.bf16.mxu1 %v895_v37  ;;  %v793_v17 = vpop.permute.xlu0 %792  ;;  %v801_v50 = vmul.f32 %v798_v53, %v1591_v26 }
 0x42d   :  { %1148 = vmatpush1.bf16.msra.mxu1 %v894_v41  ;;  %v797_v27 = vsel %vm152_vm5, %v791_v23, %v793_v17 }
 0x42e   :  { %v795_v38 = vpop.permute.xlu1 %794  ;;  %v802_v42 = vmul.f32 %v797_v27, %v1621_v46 }
 0x42f   :  { %v796_v36 = vsel %vm152_vm5, %v793_v17, %v795_v38  ;;  %v799_v0 = vsel %vm152_vm5, %v795_v38, %v789_v6 }
 0x430   :  { %v805_v49 = vpop.permute.xlu0 %804  ;;  %v800_v18 = vmul.f32 %v799_v0, %v1600_v20  ;;  %v803_v31 = vmul.f32 %v796_v36, %v1603_v33 }
 0x432   :  { %v807_v54 = vpop.permute.xlu1 %806 }
 0x433   :  { %v814_v11 = vsel %vm185_vm6, %v805_v49, %v807_v54 }
 0x434   :  { %v817_v12 = vmul.f32 %v814_v11, %v1595_v30  ;;  %v809_v9 = vpop.permute.xlu0 %808 }
 0x435   :  { %v813_v13 = vsel %vm185_vm6, %v807_v54, %v809_v9 }
 0x436   :  { %v811_v8 = vpop.permute.xlu1 %810  ;;  %v889_v35 = vpack.c.bf16 %v817_v12, %v801_v50  ;;  %v818_v56 = vmul.f32 %v813_v13, %v1606_v34 }
 0x437   :  { %v812_v26 = vsel %vm185_vm6, %v809_v9, %v811_v8  ;;  %v815_v30 = vsel %vm185_vm6, %v811_v8, %v805_v49 }
 0x438   :  { %v816_v1 = vmul.f32 %v815_v30, %v1611_v29  ;;  %v819_v51 = vmul.f32 %v812_v26, %v1618_v45  ;;  %1108 = vmatprep.subr.bf16.mxu0 %v889_v35  ;;  %v757_v52 = vpop.permute.xlu0 %756  ;;  %v890_v60 = vpack.c.bf16 %v818_v56, %v802_v42 }
 0x43a   :  { %v888_v62 = vpack.c.bf16 %v816_v1, %v800_v18  ;;  %v759_v34 = vpop.permute.xlu1 %758  ;;  %v891_v44 = vpack.c.bf16 %v819_v51, %v803_v31 }
 0x43b   :  { %v766_v33 = vsel %vm86_vm7, %v757_v52, %v759_v34 }
 0x43c   :  { %1109 = vmatpush1.bf16.msra.mxu0 %v888_v62  ;;  %1149 = vmatprep.subr.bf16.mxu1 %v891_v44  ;;  %v761_v61 = vpop.permute.xlu0 %760  ;;  %v769_v63 = vmul.f32 %v766_v33, %v1643_v16 }
 0x43d   :  { %1150 = vmatpush1.bf16.msra.mxu1 %v890_v60  ;;  %v765_v19 = vsel %vm86_vm7, %v759_v34, %v761_v61 }
 0x43e   :  { %v763_v48 = vpop.permute.xlu1 %762  ;;  %v770_v5 = vmul.f32 %v765_v19, %v1673_v2 }
 0x43f   :  { %v764_v22 = vsel %vm86_vm7, %v761_v61, %v763_v48  ;;  %v767_v58 = vsel %vm86_vm7, %v763_v48, %v757_v52 }
 0x440   :  { %v773_v20 = vpop.permute.xlu0 %772  ;;  %v768_v14 = vmul.f32 %v767_v58, %v1652_v40  ;;  %v771_v15 = vmul.f32 %v764_v22, %v1655_v43 }
 0x442   :  { %v775_v29 = vpop.permute.xlu1 %774 }
 0x443   :  { %v782_v45 = vsel %vm119_vm8, %v773_v20, %v775_v29 }
 0x444   :  { %v785_v46 = vmul.f32 %v782_v45, %v1647_v32  ;;  %v777_v59 = vpop.permute.xlu0 %776 }
 0x445   :  { %v781_v3 = vsel %vm119_vm8, %v775_v29, %v777_v59 }
 0x446   :  { %v779_v21 = vpop.permute.xlu1 %778  ;;  %v885_v7 = vpack.c.bf16 %v785_v46, %v769_v63  ;;  %v786_v10 = vmul.f32 %v781_v3, %v1658_v47 }
 0x447   :  { %v780_v16 = vsel %vm119_vm8, %v777_v59, %v779_v21  ;;  %v783_v32 = vsel %vm119_vm8, %v779_v21, %v773_v20 }
 0x448   :  { %v784_v28 = vmul.f32 %v783_v32, %v1663_v55  ;;  %v787_v4 = vmul.f32 %v780_v16, %v1670_v57  ;;  %1110 = vmatprep.subr.bf16.mxu0 %v885_v7  ;;  %v886_v47 = vpack.c.bf16 %v786_v10, %v770_v5 }
 0x44a   :  { %v884_v6 = vpack.c.bf16 %v784_v28, %v768_v14  ;;  %v887_v39 = vpack.c.bf16 %v787_v4, %v771_v15 }
 0x44c   :  { %1111 = vmatpush1.bf16.msra.mxu0 %v884_v6  ;;  %1151 = vmatprep.subr.bf16.mxu1 %v887_v39 }
 0x44d   :  { %1152 = vmatpush1.bf16.msra.mxu1 %v886_v47 }
 0x44f   :  { %1220 = vmatmul.mubr.msk.bf16.vlgmr.msra.gmra.mxu0 %vm363_vm9, %v904_v24 }
 0x450   :  { %1222 = vmatmul.mubr.msk.bf16.vlgmr.msra.gmra.mxu1 %vm363_vm9, %v904_v24 }
 0x466   :  { %v1007_v40 = vpop.f32.mrf.mxu0 }
 0x467   :  { %v1058_v43 = vpop.f32.mrf.mxu1 }
 0x468   :  { %v1009_v55 = vpop.f32.mrf.mxu0 }
 0x469   :  { %v1060_v57 = vpop.f32.mrf.mxu1 }
 0x46a   :  { %v1011_v25 = vpop.f32.mrf.mxu0 }
 0x46b   :  { %v1062_v2 = vpop.f32.mrf.mxu1 }
 0x46c   :  { %v1012_v41 = vpop.f32.mrf.mxu0 }
 0x46d   :  { %v1063_v23 = vpop.f32.mrf.mxu1 }
 0x50f   :  { %v1130_v37 = vpop.f32.mrf.mxu0 }
 0x510   :  { %v1131_v17 = vadd.f32 %v1130_v37, %v1007_v40  ;;  %v1171_v38 = vpop.f32.mrf.mxu1 }
 0x511   :  { %v1172_v49 = vadd.f32 %v1171_v38, %v1058_v43  ;;  %v1132_v53 = vpop.f32.mrf.mxu0 }
 0x512   :  { %1178 = vst [vmem:[#allocation5 + $0x40] sm:$0xff] %v1131_v17  ;;  %v1133_v54 = vadd.f32 %v1132_v53, %v1009_v55  ;;  %v1173_v11 = vpop.f32.mrf.mxu1 }
 0x513   :  { %1180 = vst [vmem:[#allocation5 + $0x50] sm:$0xff] %v1172_v49  ;;  %v1174_v50 = vadd.f32 %v1173_v11, %v1060_v57  ;;  %v1134_v12 = vpop.f32.mrf.mxu0 }
 0x514   :  { %1179 = vst [vmem:[#allocation5 + $0x48] sm:$0xff] %v1133_v54  ;;  %v1175_v9 = vpop.f32.mrf.mxu1 }
 0x515   :  { %1181 = vst [vmem:[#allocation5 + $0x58] sm:$0xff] %v1174_v50  ;;  %v1135_v36 = vpop.f32.mrf.mxu0 }
 0x516   :  { %v1176_v0 = vpop.f32.mrf.mxu1 }
 0x517   :  { %1275 = shalt.err (!%p1272_p9)
}
 0x518   :  { %s1299_s20 = smov 512   ;;  %s1300_s21 = smov 32  }
 0x519   :  { %1193 = dma.vmem_to_hbm [thread:$0]  %s1188_s19, 1536, %s2130_s7, [#allocation4], %s1299_s20, %s1299_s20, %s1300_s21  }
 0x51a   :  { %1286 = dma.done.wait [#allocation4], 1536  }
 0x51b   :  { %1287 = vsyncadd [#allocation4], 4294965760 }
 0x51c   :  { %1197 = vsyncpa [#allocation3], 1 }
 0x51d   :  { %1198 = vsyncpa [#allocation4], 1 }

</bundles_post_ra>
